<compile_context>
chip_gen: v7x
topology: tpu7x:2x2x1
jax: 0.10.0
libtpu: 0.0.40
codegen_flags: <defaults>
</compile_context>

<pallas_src>
import functools

import jax
import jax.numpy as jnp
from jax.experimental import pallas as pl
from jax.experimental.pallas import tpu as pltpu


_GUARD = 128   # zero guard lanes on each side of the flattened image (>= W+1)
_K = 3         # conv kernel size (the module hardcodes k=3, p=1)


def _pick_batch_block(batch):
    """Largest divisor of `batch` <= 8, preferring an even number of grid steps
    (so both TensorCores get work under "parallel" sharding on v7x)."""
    divisors = [d for d in range(1, min(batch, 8) + 1) if batch % d == 0]
    even = [d for d in divisors if (batch // d) % 2 == 0]
    return max(even) if even else max(divisors)


def _conv_lstm_kernel(x_ref, h_ref, c_ref, w_ref, b_ref,
                      h_out_ref, c_out_ref, xh_ref, *, width, hidden):
    """One batch block per grid step.  Channels-first, lanes = flattened spatial.

    x_ref    : (BB, Cin,  H*W)   input block (plain NCHW reshape, unpadded)
    h_ref    : (BB, Chid, H*W)   previous hidden state block
    c_ref    : (BB, Chid, H*W)   previous cell state block
    w_ref    : (9, 4*Chid, Ct)   conv weight, tap-major, input channels [h ; x],
                                 f/i/o rows pre-scaled by 0.5 (see pack_*)
    b_ref    : (4*Chid, 1)       bias column (f/i/o rows pre-scaled by 0.5), f32
    h_out_ref: (BB, Chid, H*W)
    c_out_ref: (BB, Chid, H*W)
    xh_ref   : (3, Ct, G+H*W+G)  VMEM scratch:
               [0] = [h ; x] with zero guards           (used by kw=1 taps)
               [1] = same, image column W-1 zeroed      (used by kw=0 taps)
               [2] = same, image column 0   zeroed      (used by kw=2 taps)

    The 3x3 "same" conv is 9 MXU matmuls on lane-shifted slices of the guarded
    scratch.  The zero guards reproduce the height zero-padding; the two
    column-masked copies reproduce the width zero-padding (a +-1 lane shift of
    the flattened image would otherwise wrap into the neighbouring row).
    """
    bb, _, hw = x_ref.shape
    chid = hidden
    ct = w_ref.shape[2]
    ntot = xh_ref.shape[-1]
    g = (ntot - hw) // 2

    # Zero the guard lanes once per grid step (the centre region is fully
    # overwritten for every batch element below).
    zeros_g = jnp.zeros((ct, g), dtype=xh_ref.dtype)
    for s in range(3):
        xh_ref[s, :, 0:g] = zeros_g
        xh_ref[s, :, ntot - g:ntot] = zeros_g

    # Lane masks emulating the width-1 zero padding.
    col = jax.lax.broadcasted_iota(jnp.int32, (1, hw), 1) % width
    not_last = (col != (width - 1)).astype(xh_ref.dtype)   # zero col W-1 (kw=0)
    not_first = (col != 0).astype(xh_ref.dtype)            # zero col 0   (kw=2)

    bias = b_ref[...].astype(jnp.float32)                  # (4*Chid, 1)

    for e in range(bb):
        h_prev = h_ref[e]                                   # (Chid, HW)
        x_cur = x_ref[e]                                    # (Cin,  HW)

        # In-kernel channel concat [h ; x]; h lands sublane-aligned at row 0,
        # x at row Chid (multiple of 8), so all stores are cheap.
        xh_ref[0, 0:chid, g:g + hw] = h_prev
        xh_ref[0, chid:ct, g:g + hw] = x_cur
        xh_ref[1, 0:chid, g:g + hw] = h_prev * not_last
        xh_ref[1, chid:ct, g:g + hw] = x_cur * not_last
        xh_ref[2, 0:chid, g:g + hw] = h_prev * not_first
        xh_ref[2, chid:ct, g:g + hw] = x_cur * not_first

        # 3x3 conv: 9 (4*Chid, Ct) x (Ct, HW) MXU matmuls, f32 accumulation.
        # Output channels live on sublanes -> gates are aligned sublane slices
        # and the (Chid, HW) outputs are lane-dense.
        acc = None
        for kh in range(_K):
            for kw in range(_K):
                src = 1 if kw == 0 else (2 if kw == 2 else 0)
                off = g + (kh - 1) * width + (kw - 1)
                rhs = xh_ref[src, :, off:off + hw]          # (Ct, HW)
                tap = jnp.dot(w_ref[kh * _K + kw], rhs,
                              preferred_element_type=jnp.float32)
                acc = tap if acc is None else acc + tap
        logits = acc + bias                                 # (4*Chid, HW) f32

        # Single full-width tanh.  f/i/o logits were pre-scaled by 0.5 at init,
        # so sigmoid(z) = 0.5*tanh(z/2) + 0.5 falls out of the same launch.
        t = jnp.tanh(logits)
        sig_f = 0.5 * t[0 * chid:1 * chid] + 0.5
        sig_i = 0.5 * t[1 * chid:2 * chid] + 0.5
        sig_o = 0.5 * t[2 * chid:3 * chid] + 0.5
        tanh_g = t[3 * chid:4 * chid]

        c_new = sig_f * c_ref[e].astype(jnp.float32) + sig_i * tanh_g
        h_new = sig_o * jnp.tanh(c_new)

        c_out_ref[e] = c_new.astype(c_out_ref.dtype)
        h_out_ref[e] = h_new.astype(h_out_ref.dtype)


def conv_lstm_cell(x, state, params):
    """ConvLSTMCell.forward.  x: (B, Cin, H, W) NCHW; state: None or (h, c) NCHW."""
    w_taps = params["w_taps"]            # (9, 4*Chid, Cin+Chid)
    bias_col = params["bias_col"]        # (4*Chid, 1) f32
    h0, c0 = params["h0"], params["c0"]

    batch, c_in, height, width = x.shape
    c_out, c_tot = w_taps.shape[1], w_taps.shape[2]
    chid = c_out // 4
    assert w_taps.shape[0] == _K * _K
    assert c_tot == c_in + chid, "conv weight channels must equal input_size + hidden_size"
    assert width + 1 <= _GUARD

    if state is None:
        h = jnp.broadcast_to(h0, (batch, chid, height, width)).astype(x.dtype)
        c = jnp.broadcast_to(c0, (batch, chid, height, width)).astype(x.dtype)
    else:
        h, c = state

    hw = height * width
    # NCHW -> (B, C, H*W): pure reshapes, no host-side transpose / concat / pad.
    x_f = x.reshape(batch, c_in, hw)
    h_f = h.reshape(batch, chid, hw).astype(x.dtype)
    c_f = c.reshape(batch, chid, hw).astype(x.dtype)

    bb = _pick_batch_block(batch)
    nblk = batch // bb
    ntot = hw + 2 * _GUARD

    kernel = functools.partial(_conv_lstm_kernel, width=width, hidden=chid)

    itemsize = jnp.dtype(x.dtype).itemsize
    cost = pl.CostEstimate(
        flops=int(2 * batch * hw * _K * _K * c_tot * c_out + 10 * batch * hw * chid),
        transcendentals=int(batch * hw * (c_out + chid)),
        bytes_accessed=int(itemsize * (x_f.size + h_f.size + c_f.size + 2 * batch * hw * chid)
                           + jnp.dtype(w_taps.dtype).itemsize * w_taps.size
                           + 4 * bias_col.size),
    )

    h_new, c_new = pl.pallas_call(
        kernel,
        out_shape=(
            jax.ShapeDtypeStruct((batch, chid, hw), x.dtype),
            jax.ShapeDtypeStruct((batch, chid, hw), x.dtype),
        ),
        grid_spec=pltpu.PrefetchScalarGridSpec(
            num_scalar_prefetch=0,
            grid=(nblk,),
            in_specs=[
                pl.BlockSpec((bb, c_in, hw), lambda i: (i, 0, 0)),
                pl.BlockSpec((bb, chid, hw), lambda i: (i, 0, 0)),
                pl.BlockSpec((bb, chid, hw), lambda i: (i, 0, 0)),
                pl.BlockSpec((_K * _K, c_out, c_tot), lambda i: (0, 0, 0)),
                pl.BlockSpec((c_out, 1), lambda i: (0, 0)),
            ],
            out_specs=(
                pl.BlockSpec((bb, chid, hw), lambda i: (i, 0, 0)),
                pl.BlockSpec((bb, chid, hw), lambda i: (i, 0, 0)),
            ),
            scratch_shapes=[pltpu.VMEM((3, c_tot, ntot), x.dtype)],
        ),
        compiler_params=pltpu.CompilerParams(
            dimension_semantics=("parallel",),
        ),
        cost_estimate=cost,
    )(x_f, h_f, c_f, w_taps, bias_col)

    # (B, Chid, H*W) -> (B, Chid, H, W): free reshape back to the PyTorch layout.
    return (h_new.reshape(batch, chid, height, width),
            c_new.reshape(batch, chid, height, width))


def init_conv_lstm_raw(key, input_size, hidden_size, spatial_size, k=3,
                       weight_init="xavier"):
    """Mirrors ConvLSTMCell.__init__ (xavier conv weight, zero bias / h0 / c0).
    Returns raw PyTorch-layout parameters (OIHW weight)."""
    c_in = input_size + hidden_size
    c_out = 4 * hidden_size
    fan_in = c_in * k * k
    fan_out = c_out * k * k
    if weight_init == "xavier":
        bound = (6.0 / (fan_in + fan_out)) ** 0.5     # nn.init.xavier_uniform_
    else:
        bound = (6.0 / fan_in) ** 0.5                 # nn.init.kaiming_uniform_ (a=0)
    w_oihw = jax.random.uniform(key, (c_out, c_in, k, k), jnp.float32, -bound, bound)
    bias = jnp.zeros((c_out,), jnp.float32)
    h0 = jnp.zeros((1, hidden_size, spatial_size, spatial_size), jnp.float32)
    c0 = jnp.zeros((1, hidden_size, spatial_size, spatial_size), jnp.float32)
    return w_oihw, bias, h0, c0


def pack_conv_lstm_params(w_oihw, bias, h0, c0, dtype=jnp.float32):
    """One-time (init-time) repack of the module parameters into kernel layout:
      * input channels reordered from [x, h] to [h, x] (hidden block sublane-aligned),
      * tap-major (kh*3+kw, Cout, Ct) weight,
      * the 0.5 of sigmoid(z) = 0.5*tanh(z/2) + 0.5 folded into the f/i/o rows of
        the weight and bias so the kernel needs a single full-width tanh.
    This is a bijective re-parameterisation; forward semantics are unchanged.
    """
    c_out, c_tot, k, _ = w_oihw.shape
    chid = c_out // 4
    c_in = c_tot - chid
    w_reord = jnp.concatenate([w_oihw[:, c_in:], w_oihw[:, :c_in]], axis=1)
    w_taps = jnp.transpose(w_reord, (2, 3, 0, 1)).reshape(k * k, c_out, c_tot)
    gate_scale = jnp.concatenate(
        [jnp.full((3 * chid,), 0.5, jnp.float32), jnp.ones((chid,), jnp.float32)])
    w_taps = w_taps * gate_scale[None, :, None]
    bias_col = bias.reshape(c_out, 1).astype(jnp.float32) * gate_scale[:, None]
    return {
        "w_taps": w_taps.astype(dtype),
        "bias_col": bias_col,                 # kept f32: added to the f32 logits
        "h0": h0.astype(dtype),
        "c0": c0.astype(dtype),
    }


def conv_lstm_cell_reference(x, state, w_oihw, bias, h0, c0):
    """Pure-JAX reference, same math as the PyTorch module (NCHW / OIHW)."""
    batch = x.shape[0]
    if state is None:
        h = jnp.broadcast_to(h0, (batch,) + h0.shape[1:])
        c = jnp.broadcast_to(c0, (batch,) + c0.shape[1:])
    else:
        h, c = state
    pad = (w_oihw.shape[2] - 1) // 2
    xh = jnp.concatenate([x, h], axis=1)
    logits = jax.lax.conv_general_dilated(
        xh, w_oihw, window_strides=(1, 1),
        padding=((pad, pad), (pad, pad)),
        dimension_numbers=("NCHW", "OIHW", "NCHW"),
        precision=jax.lax.Precision.HIGHEST)
    logits = logits + bias.reshape(1, -1, 1, 1)
    f, i, o, g = jnp.split(logits, 4, axis=1)
    c_new = jax.nn.sigmoid(f) * c + jax.nn.sigmoid(i) * jnp.tanh(g)
    h_new = jax.nn.sigmoid(o) * jnp.tanh(c_new)
    return h_new, c_new


if __name__ == "__main__":
    key = jax.random.PRNGKey(0)
    k_w, k_b, k_x, k_h, k_c = jax.random.split(key, 5)

    batch, input_size, hidden_size, spatial = 2, 4, 32, 16

    w_oihw, bias, h0, c0 = init_conv_lstm_raw(k_w, input_size, hidden_size, spatial)
    # Test-only perturbation so the bias path is exercised (module init is zeros).
    bias = 0.1 * jax.random.normal(k_b, (4 * hidden_size,), jnp.float32)

    x = jax.random.normal(k_x, (batch, input_size, spatial, spatial), jnp.float32)
    h_in = jax.random.normal(k_h, (batch, hidden_size, spatial, spatial), jnp.float32)
    c_in = jax.random.normal(k_c, (batch, hidden_size, spatial, spatial), jnp.float32)

    fwd = jax.jit(conv_lstm_cell)

    # ---- f32, explicit (h, c) state -----------------------------------------
    params = pack_conv_lstm_params(w_oihw, bias, h0, c0, dtype=jnp.float32)
    h1, c1 = fwd(x, (h_in, c_in), params)
    h1 = jax.block_until_ready(h1)
    c1 = jax.block_until_ready(c1)
    h1_ref, c1_ref = conv_lstm_cell_reference(x, (h_in, c_in), w_oihw, bias, h0, c0)
    assert h1.shape == (batch, hidden_size, spatial, spatial)
    assert c1.shape == (batch, hidden_size, spatial, spatial)
    assert jnp.allclose(h1, h1_ref, atol=1e-4, rtol=1e-4), \
        f"h mismatch: {float(jnp.max(jnp.abs(h1 - h1_ref)))}"
    assert jnp.allclose(c1, c1_ref, atol=1e-4, rtol=1e-4), \
        f"c mismatch: {float(jnp.max(jnp.abs(c1 - c1_ref)))}"

    # ---- f32, state=None -> learned (zero-init) h0/c0 broadcast over batch ---
    h2, c2 = fwd(x, None, params)
    h2 = jax.block_until_ready(h2)
    c2 = jax.block_until_ready(c2)
    h2_ref, c2_ref = conv_lstm_cell_reference(x, None, w_oihw, bias, h0, c0)
    assert jnp.allclose(h2, h2_ref, atol=1e-4, rtol=1e-4)
    assert jnp.allclose(c2, c2_ref, atol=1e-4, rtol=1e-4)

    # ---- bf16 activations/weights (f32 accumulation + f32 gate math) ---------
    params_bf16 = pack_conv_lstm_params(w_oihw, bias, h0, c0, dtype=jnp.bfloat16)
    x_b = x.astype(jnp.bfloat16)
    h_b = h_in.astype(jnp.bfloat16)
    c_b = c_in.astype(jnp.bfloat16)
    h3, c3 = fwd(x_b, (h_b, c_b), params_bf16)
    h3 = jax.block_until_ready(h3)
    c3 = jax.block_until_ready(c3)
    h3_ref, c3_ref = conv_lstm_cell_reference(
        x_b.astype(jnp.float32),
        (h_b.astype(jnp.float32), c_b.astype(jnp.float32)),
        w_oihw, bias, h0, c0)
    assert h3.dtype == jnp.bfloat16 and c3.dtype == jnp.bfloat16
    assert jnp.allclose(h3.astype(jnp.float32), h3_ref, atol=5e-2, rtol=5e-2)
    assert jnp.allclose(c3.astype(jnp.float32), c3_ref, atol=5e-2, rtol=5e-2)

    print("KERNEL_OK")
</pallas_src>

<mosaic_0001>
module attributes {stable_mosaic.version = 11 : i64} {
  func.func @_conv_lstm_kernel(%arg0: i32, %arg1: memref<1x4x256xf32, #tpu.memory_space<vmem>>, %arg2: memref<1x32x256xf32, #tpu.memory_space<vmem>>, %arg3: memref<1x32x256xf32, #tpu.memory_space<vmem>>, %arg4: memref<9x128x36xf32, #tpu.memory_space<vmem>>, %arg5: memref<128x1xf32, #tpu.memory_space<vmem>>, %arg6: memref<1x32x256xf32, #tpu.memory_space<vmem>>, %arg7: memref<1x32x256xf32, #tpu.memory_space<vmem>>, %arg8: memref<3x36x512xf32, #tpu.memory_space<vmem>>) attributes {dimension_semantics = [#tpu.dimension_semantics<parallel>], iteration_bounds = array<i64: 2>, scalar_prefetch = 0 : i64, scratch_operands = 1 : i64, tpu.core_type = #tpu.core_type<tc>, window_params = [{transform_indices = @transform_0, window_bounds = array<i64: 1, 4, 256>}, {transform_indices = @transform_1, window_bounds = array<i64: 1, 32, 256>}, {transform_indices = @transform_2, window_bounds = array<i64: 1, 32, 256>}, {pipeline_mode = #tpu.pipeline_mode<synchronous>, transform_indices = @transform_3, window_bounds = array<i64: 9, 128, 36>}, {pipeline_mode = #tpu.pipeline_mode<synchronous>, transform_indices = @transform_4, window_bounds = array<i64: 128, 1>}, {transform_indices = @transform_5, window_bounds = array<i64: 1, 32, 256>}, {transform_indices = @transform_6, window_bounds = array<i64: 1, 32, 256>}]} {
    %cst = arith.constant 0.000000e+00 : f32
    %0 = vector.broadcast %cst : f32 to vector<36x128xf32>
    %c0 = arith.constant 0 : index
    %c0_0 = arith.constant 0 : index
    %c0_1 = arith.constant 0 : index
    %1 = vector.load %arg8[%c0, %c0_0, %c0_1] : memref<3x36x512xf32, #tpu.memory_space<vmem>>, vector<1x36x128xf32>
    %2 = vector.shape_cast %1 : vector<1x36x128xf32> to vector<36x128xf32>
    %3 = vector.shape_cast %0 : vector<36x128xf32> to vector<1x36x128xf32>
    tpu.vector_store %arg8[%c0, %c0_0, %c0_1], %3 {strides = array<i32>} : memref<3x36x512xf32, #tpu.memory_space<vmem>>, vector<1x36x128xf32>,
    %c0_2 = arith.constant 0 : index
    %c0_3 = arith.constant 0 : index
    %c384 = arith.constant 384 : index
    %4 = vector.load %arg8[%c0_2, %c0_3, %c384] : memref<3x36x512xf32, #tpu.memory_space<vmem>>, vector<1x36x128xf32>
    %5 = vector.shape_cast %4 : vector<1x36x128xf32> to vector<36x128xf32>
    %6 = vector.shape_cast %0 : vector<36x128xf32> to vector<1x36x128xf32>
    tpu.vector_store %arg8[%c0_2, %c0_3, %c384], %6 {strides = array<i32>} : memref<3x36x512xf32, #tpu.memory_space<vmem>>, vector<1x36x128xf32>,
    %c1 = arith.constant 1 : index
    %c0_4 = arith.constant 0 : index
    %c0_5 = arith.constant 0 : index
    %7 = vector.load %arg8[%c1, %c0_4, %c0_5] : memref<3x36x512xf32, #tpu.memory_space<vmem>>, vector<1x36x128xf32>
    %8 = vector.shape_cast %7 : vector<1x36x128xf32> to vector<36x128xf32>
    %9 = vector.shape_cast %0 : vector<36x128xf32> to vector<1x36x128xf32>
    tpu.vector_store %arg8[%c1, %c0_4, %c0_5], %9 {strides = array<i32>} : memref<3x36x512xf32, #tpu.memory_space<vmem>>, vector<1x36x128xf32>,
    %c1_6 = arith.constant 1 : index
    %c0_7 = arith.constant 0 : index
    %c384_8 = arith.constant 384 : index
    %10 = vector.load %arg8[%c1_6, %c0_7, %c384_8] : memref<3x36x512xf32, #tpu.memory_space<vmem>>, vector<1x36x128xf32>
    %11 = vector.shape_cast %10 : vector<1x36x128xf32> to vector<36x128xf32>
    %12 = vector.shape_cast %0 : vector<36x128xf32> to vector<1x36x128xf32>
    tpu.vector_store %arg8[%c1_6, %c0_7, %c384_8], %12 {strides = array<i32>} : memref<3x36x512xf32, #tpu.memory_space<vmem>>, vector<1x36x128xf32>,
    %c2 = arith.constant 2 : index
    %c0_9 = arith.constant 0 : index
    %c0_10 = arith.constant 0 : index
    %13 = vector.load %arg8[%c2, %c0_9, %c0_10] : memref<3x36x512xf32, #tpu.memory_space<vmem>>, vector<1x36x128xf32>
    %14 = vector.shape_cast %13 : vector<1x36x128xf32> to vector<36x128xf32>
    %15 = vector.shape_cast %0 : vector<36x128xf32> to vector<1x36x128xf32>
    tpu.vector_store %arg8[%c2, %c0_9, %c0_10], %15 {strides = array<i32>} : memref<3x36x512xf32, #tpu.memory_space<vmem>>, vector<1x36x128xf32>,
    %c2_11 = arith.constant 2 : index
    %c0_12 = arith.constant 0 : index
    %c384_13 = arith.constant 384 : index
    %16 = vector.load %arg8[%c2_11, %c0_12, %c384_13] : memref<3x36x512xf32, #tpu.memory_space<vmem>>, vector<1x36x128xf32>
    %17 = vector.shape_cast %16 : vector<1x36x128xf32> to vector<36x128xf32>
    %18 = vector.shape_cast %0 : vector<36x128xf32> to vector<1x36x128xf32>
    tpu.vector_store %arg8[%c2_11, %c0_12, %c384_13], %18 {strides = array<i32>} : memref<3x36x512xf32, #tpu.memory_space<vmem>>, vector<1x36x128xf32>,
    %19 = tpu.iota {dimensions = array<i32: 1>} : vector<1x256xi32>
    %c16_i32 = arith.constant 16 : i32
    %c0_i32 = arith.constant 0 : i32
    %20 = arith.cmpi eq, %c16_i32, %c0_i32 : i32
    %c1_i32 = arith.constant 1 : i32
    %21 = arith.select %20, %c1_i32, %c16_i32 : i32
    %22 = vector.broadcast %21 : i32 to vector<1x256xi32>
    %23 = arith.remsi %19, %22 : vector<1x256xi32>
    %c0_i32_14 = arith.constant 0 : i32
    %24 = vector.broadcast %c0_i32_14 : i32 to vector<1x256xi32>
    %25 = arith.cmpi ne, %23, %24 : vector<1x256xi32>
    %c0_i32_15 = arith.constant 0 : i32
    %26 = vector.broadcast %c0_i32_15 : i32 to vector<1x256xi32>
    %27 = arith.cmpi slt, %23, %26 : vector<1x256xi32>
    %c0_i32_16 = arith.constant 0 : i32
    %28 = arith.cmpi slt, %21, %c0_i32_16 : i32
    %29 = vector.broadcast %28 : i1 to vector<1x256xi1>
    %30 = vector.broadcast %29 : vector<1x256xi1> to vector<1x256xi1>
    %31 = arith.xori %27, %30 : vector<1x256xi1>
    %32 = arith.andi %31, %25 : vector<1x256xi1>
    %33 = vector.broadcast %21 : i32 to vector<1x256xi32>
    %34 = arith.addi %23, %33 : vector<1x256xi32>
    %35 = arith.select %32, %34, %23 : vector<1x256xi1>, vector<1x256xi32>
    %c15_i32 = arith.constant 15 : i32
    %36 = vector.broadcast %c15_i32 : i32 to vector<1x256xi32>
    %37 = arith.cmpi ne, %35, %36 : vector<1x256xi32>
    %38 = arith.extui %37 : vector<1x256xi1> to vector<1x256xi32>
    %39 = arith.sitofp %38 : vector<1x256xi32> to vector<1x256xf32>
    %c0_i32_17 = arith.constant 0 : i32
    %40 = vector.broadcast %c0_i32_17 : i32 to vector<1x256xi32>
    %41 = arith.cmpi ne, %35, %40 : vector<1x256xi32>
    %42 = arith.extui %41 : vector<1x256xi1> to vector<1x256xi32>
    %43 = arith.sitofp %42 : vector<1x256xi32> to vector<1x256xf32>
    %c0_18 = arith.constant 0 : index
    %c0_19 = arith.constant 0 : index
    %44 = vector.load %arg5[%c0_18, %c0_19] : memref<128x1xf32, #tpu.memory_space<vmem>>, vector<128x1xf32>
    %c0_20 = arith.constant 0 : index
    %c0_21 = arith.constant 0 : index
    %c0_22 = arith.constant 0 : index
    %45 = vector.load %arg2[%c0_20, %c0_21, %c0_22] : memref<1x32x256xf32, #tpu.memory_space<vmem>>, vector<1x32x256xf32>
    %46 = vector.shape_cast %45 : vector<1x32x256xf32> to vector<32x256xf32>
    %c0_23 = arith.constant 0 : index
    %c0_24 = arith.constant 0 : index
    %c0_25 = arith.constant 0 : index
    %47 = vector.load %arg1[%c0_23, %c0_24, %c0_25] : memref<1x4x256xf32, #tpu.memory_space<vmem>>, vector<1x4x256xf32>
    %48 = vector.shape_cast %47 : vector<1x4x256xf32> to vector<4x256xf32>
    %c0_26 = arith.constant 0 : index
    %c0_27 = arith.constant 0 : index
    %c128 = arith.constant 128 : index
    %49 = vector.load %arg8[%c0_26, %c0_27, %c128] : memref<3x36x512xf32, #tpu.memory_space<vmem>>, vector<1x32x256xf32>
    %50 = vector.shape_cast %49 : vector<1x32x256xf32> to vector<32x256xf32>
    %51 = vector.shape_cast %46 : vector<32x256xf32> to vector<1x32x256xf32>
    tpu.vector_store %arg8[%c0_26, %c0_27, %c128], %51 {strides = array<i32>} : memref<3x36x512xf32, #tpu.memory_space<vmem>>, vector<1x32x256xf32>,
    %c0_28 = arith.constant 0 : index
    %c32 = arith.constant 32 : index
    %c128_29 = arith.constant 128 : index
    %52 = vector.load %arg8[%c0_28, %c32, %c128_29] : memref<3x36x512xf32, #tpu.memory_space<vmem>>, vector<1x4x256xf32>
    %53 = vector.shape_cast %52 : vector<1x4x256xf32> to vector<4x256xf32>
    %54 = vector.shape_cast %48 : vector<4x256xf32> to vector<1x4x256xf32>
    tpu.vector_store %arg8[%c0_28, %c32, %c128_29], %54 {strides = array<i32>} : memref<3x36x512xf32, #tpu.memory_space<vmem>>, vector<1x4x256xf32>,
    %55 = vector.broadcast %39 : vector<1x256xf32> to vector<32x256xf32>
    %56 = arith.mulf %46, %55 : vector<32x256xf32>
    %c1_30 = arith.constant 1 : index
    %c0_31 = arith.constant 0 : index
    %c128_32 = arith.constant 128 : index
    %57 = vector.load %arg8[%c1_30, %c0_31, %c128_32] : memref<3x36x512xf32, #tpu.memory_space<vmem>>, vector<1x32x256xf32>
    %58 = vector.shape_cast %57 : vector<1x32x256xf32> to vector<32x256xf32>
    %59 = vector.shape_cast %56 : vector<32x256xf32> to vector<1x32x256xf32>
    tpu.vector_store %arg8[%c1_30, %c0_31, %c128_32], %59 {strides = array<i32>} : memref<3x36x512xf32, #tpu.memory_space<vmem>>, vector<1x32x256xf32>,
    %60 = vector.broadcast %39 : vector<1x256xf32> to vector<4x256xf32>
    %61 = arith.mulf %48, %60 : vector<4x256xf32>
    %c1_33 = arith.constant 1 : index
    %c32_34 = arith.constant 32 : index
    %c128_35 = arith.constant 128 : index
    %62 = vector.load %arg8[%c1_33, %c32_34, %c128_35] : memref<3x36x512xf32, #tpu.memory_space<vmem>>, vector<1x4x256xf32>
    %63 = vector.shape_cast %62 : vector<1x4x256xf32> to vector<4x256xf32>
    %64 = vector.shape_cast %61 : vector<4x256xf32> to vector<1x4x256xf32>
    tpu.vector_store %arg8[%c1_33, %c32_34, %c128_35], %64 {strides = array<i32>} : memref<3x36x512xf32, #tpu.memory_space<vmem>>, vector<1x4x256xf32>,
    %65 = vector.broadcast %43 : vector<1x256xf32> to vector<32x256xf32>
    %66 = arith.mulf %46, %65 : vector<32x256xf32>
    %c2_36 = arith.constant 2 : index
    %c0_37 = arith.constant 0 : index
    %c128_38 = arith.constant 128 : index
    %67 = vector.load %arg8[%c2_36, %c0_37, %c128_38] : memref<3x36x512xf32, #tpu.memory_space<vmem>>, vector<1x32x256xf32>
    %68 = vector.shape_cast %67 : vector<1x32x256xf32> to vector<32x256xf32>
    %69 = vector.shape_cast %66 : vector<32x256xf32> to vector<1x32x256xf32>
    tpu.vector_store %arg8[%c2_36, %c0_37, %c128_38], %69 {strides = array<i32>} : memref<3x36x512xf32, #tpu.memory_space<vmem>>, vector<1x32x256xf32>,
    %70 = vector.broadcast %43 : vector<1x256xf32> to vector<4x256xf32>
    %71 = arith.mulf %48, %70 : vector<4x256xf32>
    %c2_39 = arith.constant 2 : index
    %c32_40 = arith.constant 32 : index
    %c128_41 = arith.constant 128 : index
    %72 = vector.load %arg8[%c2_39, %c32_40, %c128_41] : memref<3x36x512xf32, #tpu.memory_space<vmem>>, vector<1x4x256xf32>
    %73 = vector.shape_cast %72 : vector<1x4x256xf32> to vector<4x256xf32>
    %74 = vector.shape_cast %71 : vector<4x256xf32> to vector<1x4x256xf32>
    tpu.vector_store %arg8[%c2_39, %c32_40, %c128_41], %74 {strides = array<i32>} : memref<3x36x512xf32, #tpu.memory_space<vmem>>, vector<1x4x256xf32>,
    %c1_42 = arith.constant 1 : index
    %c0_43 = arith.constant 0 : index
    %c111 = arith.constant 111 : index
    %75 = vector.load %arg8[%c1_42, %c0_43, %c111] : memref<3x36x512xf32, #tpu.memory_space<vmem>>, vector<1x36x256xf32>
    %76 = vector.shape_cast %75 : vector<1x36x256xf32> to vector<36x256xf32>
    %c0_44 = arith.constant 0 : index
    %c0_45 = arith.constant 0 : index
    %c0_46 = arith.constant 0 : index
    %77 = vector.load %arg4[%c0_44, %c0_45, %c0_46] : memref<9x128x36xf32, #tpu.memory_space<vmem>>, vector<1x128x36xf32>
    %78 = vector.shape_cast %77 : vector<1x128x36xf32> to vector<128x36xf32>
    %cst_47 = arith.constant dense<0.000000e+00> : vector<128x256xf32>
    %79 = tpu.matmul %78, %76, %cst_47 {dimension_numbers = #tpu.dot_dimension_numbers<[1], [0], [0], [1], [0, 0, 1, 1], [], []>} : vector<128x36xf32>, vector<36x256xf32>, vector<128x256xf32> -> vector<128x256xf32>
    %c0_48 = arith.constant 0 : index
    %c0_49 = arith.constant 0 : index
    %c112 = arith.constant 112 : index
    %80 = vector.load %arg8[%c0_48, %c0_49, %c112] : memref<3x36x512xf32, #tpu.memory_space<vmem>>, vector<1x36x256xf32>
    %81 = vector.shape_cast %80 : vector<1x36x256xf32> to vector<36x256xf32>
    %c1_50 = arith.constant 1 : index
    %c0_51 = arith.constant 0 : index
    %c0_52 = arith.constant 0 : index
    %82 = vector.load %arg4[%c1_50, %c0_51, %c0_52] : memref<9x128x36xf32, #tpu.memory_space<vmem>>, vector<1x128x36xf32>
    %83 = vector.shape_cast %82 : vector<1x128x36xf32> to vector<128x36xf32>
    %cst_53 = arith.constant dense<0.000000e+00> : vector<128x256xf32>
    %84 = tpu.matmul %83, %81, %cst_53 {dimension_numbers = #tpu.dot_dimension_numbers<[1], [0], [0], [1], [0, 0, 1, 1], [], []>} : vector<128x36xf32>, vector<36x256xf32>, vector<128x256xf32> -> vector<128x256xf32>
    %85 = arith.addf %79, %84 : vector<128x256xf32>
    %c2_54 = arith.constant 2 : index
    %c0_55 = arith.constant 0 : index
    %c113 = arith.constant 113 : index
    %86 = vector.load %arg8[%c2_54, %c0_55, %c113] : memref<3x36x512xf32, #tpu.memory_space<vmem>>, vector<1x36x256xf32>
    %87 = vector.shape_cast %86 : vector<1x36x256xf32> to vector<36x256xf32>
    %c2_56 = arith.constant 2 : index
    %c0_57 = arith.constant 0 : index
    %c0_58 = arith.constant 0 : index
    %88 = vector.load %arg4[%c2_56, %c0_57, %c0_58] : memref<9x128x36xf32, #tpu.memory_space<vmem>>, vector<1x128x36xf32>
    %89 = vector.shape_cast %88 : vector<1x128x36xf32> to vector<128x36xf32>
    %cst_59 = arith.constant dense<0.000000e+00> : vector<128x256xf32>
    %90 = tpu.matmul %89, %87, %cst_59 {dimension_numbers = #tpu.dot_dimension_numbers<[1], [0], [0], [1], [0, 0, 1, 1], [], []>} : vector<128x36xf32>, vector<36x256xf32>, vector<128x256xf32> -> vector<128x256xf32>
    %91 = arith.addf %85, %90 : vector<128x256xf32>
    %c1_60 = arith.constant 1 : index
    %c0_61 = arith.constant 0 : index
    %c127 = arith.constant 127 : index
    %92 = vector.load %arg8[%c1_60, %c0_61, %c127] : memref<3x36x512xf32, #tpu.memory_space<vmem>>, vector<1x36x256xf32>
    %93 = vector.shape_cast %92 : vector<1x36x256xf32> to vector<36x256xf32>
    %c3 = arith.constant 3 : index
    %c0_62 = arith.constant 0 : index
    %c0_63 = arith.constant 0 : index
    %94 = vector.load %arg4[%c3, %c0_62, %c0_63] : memref<9x128x36xf32, #tpu.memory_space<vmem>>, vector<1x128x36xf32>
    %95 = vector.shape_cast %94 : vector<1x128x36xf32> to vector<128x36xf32>
    %cst_64 = arith.constant dense<0.000000e+00> : vector<128x256xf32>
    %96 = tpu.matmul %95, %93, %cst_64 {dimension_numbers = #tpu.dot_dimension_numbers<[1], [0], [0], [1], [0, 0, 1, 1], [], []>} : vector<128x36xf32>, vector<36x256xf32>, vector<128x256xf32> -> vector<128x256xf32>
    %97 = arith.addf %91, %96 : vector<128x256xf32>
    %c0_65 = arith.constant 0 : index
    %c0_66 = arith.constant 0 : index
    %c128_67 = arith.constant 128 : index
    %98 = vector.load %arg8[%c0_65, %c0_66, %c128_67] : memref<3x36x512xf32, #tpu.memory_space<vmem>>, vector<1x36x256xf32>
    %99 = vector.shape_cast %98 : vector<1x36x256xf32> to vector<36x256xf32>
    %c4 = arith.constant 4 : index
    %c0_68 = arith.constant 0 : index
    %c0_69 = arith.constant 0 : index
    %100 = vector.load %arg4[%c4, %c0_68, %c0_69] : memref<9x128x36xf32, #tpu.memory_space<vmem>>, vector<1x128x36xf32>
    %101 = vector.shape_cast %100 : vector<1x128x36xf32> to vector<128x36xf32>
    %cst_70 = arith.constant dense<0.000000e+00> : vector<128x256xf32>
    %102 = tpu.matmul %101, %99, %cst_70 {dimension_numbers = #tpu.dot_dimension_numbers<[1], [0], [0], [1], [0, 0, 1, 1], [], []>} : vector<128x36xf32>, vector<36x256xf32>, vector<128x256xf32> -> vector<128x256xf32>
    %103 = arith.addf %97, %102 : vector<128x256xf32>
    %c2_71 = arith.constant 2 : index
    %c0_72 = arith.constant 0 : index
    %c129 = arith.constant 129 : index
    %104 = vector.load %arg8[%c2_71, %c0_72, %c129] : memref<3x36x512xf32, #tpu.memory_space<vmem>>, vector<1x36x256xf32>
    %105 = vector.shape_cast %104 : vector<1x36x256xf32> to vector<36x256xf32>
    %c5 = arith.constant 5 : index
    %c0_73 = arith.constant 0 : index
    %c0_74 = arith.constant 0 : index
    %106 = vector.load %arg4[%c5, %c0_73, %c0_74] : memref<9x128x36xf32, #tpu.memory_space<vmem>>, vector<1x128x36xf32>
    %107 = vector.shape_cast %106 : vector<1x128x36xf32> to vector<128x36xf32>
    %cst_75 = arith.constant dense<0.000000e+00> : vector<128x256xf32>
    %108 = tpu.matmul %107, %105, %cst_75 {dimension_numbers = #tpu.dot_dimension_numbers<[1], [0], [0], [1], [0, 0, 1, 1], [], []>} : vector<128x36xf32>, vector<36x256xf32>, vector<128x256xf32> -> vector<128x256xf32>
    %109 = arith.addf %103, %108 : vector<128x256xf32>
    %c1_76 = arith.constant 1 : index
    %c0_77 = arith.constant 0 : index
    %c143 = arith.constant 143 : index
    %110 = vector.load %arg8[%c1_76, %c0_77, %c143] : memref<3x36x512xf32, #tpu.memory_space<vmem>>, vector<1x36x256xf32>
    %111 = vector.shape_cast %110 : vector<1x36x256xf32> to vector<36x256xf32>
    %c6 = arith.constant 6 : index
    %c0_78 = arith.constant 0 : index
    %c0_79 = arith.constant 0 : index
    %112 = vector.load %arg4[%c6, %c0_78, %c0_79] : memref<9x128x36xf32, #tpu.memory_space<vmem>>, vector<1x128x36xf32>
    %113 = vector.shape_cast %112 : vector<1x128x36xf32> to vector<128x36xf32>
    %cst_80 = arith.constant dense<0.000000e+00> : vector<128x256xf32>
    %114 = tpu.matmul %113, %111, %cst_80 {dimension_numbers = #tpu.dot_dimension_numbers<[1], [0], [0], [1], [0, 0, 1, 1], [], []>} : vector<128x36xf32>, vector<36x256xf32>, vector<128x256xf32> -> vector<128x256xf32>
    %115 = arith.addf %109, %114 : vector<128x256xf32>
    %c0_81 = arith.constant 0 : index
    %c0_82 = arith.constant 0 : index
    %c144 = arith.constant 144 : index
    %116 = vector.load %arg8[%c0_81, %c0_82, %c144] : memref<3x36x512xf32, #tpu.memory_space<vmem>>, vector<1x36x256xf32>
    %117 = vector.shape_cast %116 : vector<1x36x256xf32> to vector<36x256xf32>
    %c7 = arith.constant 7 : index
    %c0_83 = arith.constant 0 : index
    %c0_84 = arith.constant 0 : index
    %118 = vector.load %arg4[%c7, %c0_83, %c0_84] : memref<9x128x36xf32, #tpu.memory_space<vmem>>, vector<1x128x36xf32>
    %119 = vector.shape_cast %118 : vector<1x128x36xf32> to vector<128x36xf32>
    %cst_85 = arith.constant dense<0.000000e+00> : vector<128x256xf32>
    %120 = tpu.matmul %119, %117, %cst_85 {dimension_numbers = #tpu.dot_dimension_numbers<[1], [0], [0], [1], [0, 0, 1, 1], [], []>} : vector<128x36xf32>, vector<36x256xf32>, vector<128x256xf32> -> vector<128x256xf32>
    %121 = arith.addf %115, %120 : vector<128x256xf32>
    %c2_86 = arith.constant 2 : index
    %c0_87 = arith.constant 0 : index
    %c145 = arith.constant 145 : index
    %122 = vector.load %arg8[%c2_86, %c0_87, %c145] : memref<3x36x512xf32, #tpu.memory_space<vmem>>, vector<1x36x256xf32>
    %123 = vector.shape_cast %122 : vector<1x36x256xf32> to vector<36x256xf32>
    %c8 = arith.constant 8 : index
    %c0_88 = arith.constant 0 : index
    %c0_89 = arith.constant 0 : index
    %124 = vector.load %arg4[%c8, %c0_88, %c0_89] : memref<9x128x36xf32, #tpu.memory_space<vmem>>, vector<1x128x36xf32>
    %125 = vector.shape_cast %124 : vector<1x128x36xf32> to vector<128x36xf32>
    %cst_90 = arith.constant dense<0.000000e+00> : vector<128x256xf32>
    %126 = tpu.matmul %125, %123, %cst_90 {dimension_numbers = #tpu.dot_dimension_numbers<[1], [0], [0], [1], [0, 0, 1, 1], [], []>} : vector<128x36xf32>, vector<36x256xf32>, vector<128x256xf32> -> vector<128x256xf32>
    %127 = arith.addf %121, %126 : vector<128x256xf32>
    %128 = vector.broadcast %44 : vector<128x1xf32> to vector<128x256xf32>
    %129 = arith.addf %127, %128 : vector<128x256xf32>
    %130 = math.tanh %129 : vector<128x256xf32>
    %131 = vector.extract_strided_slice %130 {offsets = [0, 0], sizes = [32, 256], strides = [1, 1]} : vector<128x256xf32> to vector<32x256xf32>
    %cst_91 = arith.constant 5.000000e-01 : f32
    %132 = vector.broadcast %cst_91 : f32 to vector<32x256xf32>
    %133 = arith.mulf %132, %131 : vector<32x256xf32>
    %cst_92 = arith.constant 5.000000e-01 : f32
    %134 = vector.broadcast %cst_92 : f32 to vector<32x256xf32>
    %135 = arith.addf %133, %134 : vector<32x256xf32>
    %136 = vector.extract_strided_slice %130 {offsets = [32, 0], sizes = [32, 256], strides = [1, 1]} : vector<128x256xf32> to vector<32x256xf32>
    %cst_93 = arith.constant 5.000000e-01 : f32
    %137 = vector.broadcast %cst_93 : f32 to vector<32x256xf32>
    %138 = arith.mulf %137, %136 : vector<32x256xf32>
    %cst_94 = arith.constant 5.000000e-01 : f32
    %139 = vector.broadcast %cst_94 : f32 to vector<32x256xf32>
    %140 = arith.addf %138, %139 : vector<32x256xf32>
    %141 = vector.extract_strided_slice %130 {offsets = [64, 0], sizes = [32, 256], strides = [1, 1]} : vector<128x256xf32> to vector<32x256xf32>
    %cst_95 = arith.constant 5.000000e-01 : f32
    %142 = vector.broadcast %cst_95 : f32 to vector<32x256xf32>
    %143 = arith.mulf %142, %141 : vector<32x256xf32>
    %cst_96 = arith.constant 5.000000e-01 : f32
    %144 = vector.broadcast %cst_96 : f32 to vector<32x256xf32>
    %145 = arith.addf %143, %144 : vector<32x256xf32>
    %146 = vector.extract_strided_slice %130 {offsets = [96, 0], sizes = [32, 256], strides = [1, 1]} : vector<128x256xf32> to vector<32x256xf32>
    %c0_97 = arith.constant 0 : index
    %c0_98 = arith.constant 0 : index
    %c0_99 = arith.constant 0 : index
    %147 = vector.load %arg3[%c0_97, %c0_98, %c0_99] : memref<1x32x256xf32, #tpu.memory_space<vmem>>, vector<1x32x256xf32>
    %148 = vector.shape_cast %147 : vector<1x32x256xf32> to vector<32x256xf32>
    %149 = arith.mulf %135, %148 : vector<32x256xf32>
    %150 = arith.mulf %140, %146 : vector<32x256xf32>
    %151 = arith.addf %149, %150 : vector<32x256xf32>
    %152 = math.tanh %151 : vector<32x256xf32>
    %153 = arith.mulf %145, %152 : vector<32x256xf32>
    %c0_100 = arith.constant 0 : index
    %c0_101 = arith.constant 0 : index
    %c0_102 = arith.constant 0 : index
    %154 = vector.load %arg7[%c0_100, %c0_101, %c0_102] : memref<1x32x256xf32, #tpu.memory_space<vmem>>, vector<1x32x256xf32>
    %155 = vector.shape_cast %154 : vector<1x32x256xf32> to vector<32x256xf32>
    %156 = vector.shape_cast %151 : vector<32x256xf32> to vector<1x32x256xf32>
    tpu.vector_store %arg7[%c0_100, %c0_101, %c0_102], %156 {strides = array<i32>} : memref<1x32x256xf32, #tpu.memory_space<vmem>>, vector<1x32x256xf32>,
    %c0_103 = arith.constant 0 : index
    %c0_104 = arith.constant 0 : index
    %c0_105 = arith.constant 0 : index
    %157 = vector.load %arg6[%c0_103, %c0_104, %c0_105] : memref<1x32x256xf32, #tpu.memory_space<vmem>>, vector<1x32x256xf32>
    %158 = vector.shape_cast %157 : vector<1x32x256xf32> to vector<32x256xf32>
    %159 = vector.shape_cast %153 : vector<32x256xf32> to vector<1x32x256xf32>
    tpu.vector_store %arg6[%c0_103, %c0_104, %c0_105], %159 {strides = array<i32>} : memref<1x32x256xf32, #tpu.memory_space<vmem>>, vector<1x32x256xf32>,
    return
  }
  func.func @transform_0(%arg0: i32) -> (i32, i32, i32) {
    %c0_i32 = arith.constant 0 : i32
    %c0_i32_0 = arith.constant 0 : i32
    %c0_i32_1 = arith.constant 0 : i32
    return %arg0, %c0_i32, %c0_i32_0 : i32, i32, i32
  }
  func.func @transform_1(%arg0: i32) -> (i32, i32, i32) {
    %c0_i32 = arith.constant 0 : i32
    %c0_i32_0 = arith.constant 0 : i32
    %c0_i32_1 = arith.constant 0 : i32
    return %arg0, %c0_i32, %c0_i32_0 : i32, i32, i32
  }
  func.func @transform_2(%arg0: i32) -> (i32, i32, i32) {
    %c0_i32 = arith.constant 0 : i32
    %c0_i32_0 = arith.constant 0 : i32
    %c0_i32_1 = arith.constant 0 : i32
    return %arg0, %c0_i32, %c0_i32_0 : i32, i32, i32
  }
  func.func @transform_3(%arg0: i32) -> (i32, i32, i32) {
    %c0_i32 = arith.constant 0 : i32
    %c0_i32_0 = arith.constant 0 : i32
    %c0_i32_1 = arith.constant 0 : i32
    %c0_i32_2 = arith.constant 0 : i32
    return %c0_i32, %c0_i32_0, %c0_i32_1 : i32, i32, i32
  }
  func.func @transform_4(%arg0: i32) -> (i32, i32) {
    %c0_i32 = arith.constant 0 : i32
    %c0_i32_0 = arith.constant 0 : i32
    %c0_i32_1 = arith.constant 0 : i32
    return %c0_i32, %c0_i32_0 : i32, i32
  }
  func.func @transform_5(%arg0: i32) -> (i32, i32, i32) {
    %c0_i32 = arith.constant 0 : i32
    %c0_i32_0 = arith.constant 0 : i32
    %c0_i32_1 = arith.constant 0 : i32
    return %arg0, %c0_i32, %c0_i32_0 : i32, i32, i32
  }
  func.func @transform_6(%arg0: i32) -> (i32, i32, i32) {
    %c0_i32 = arith.constant 0 : i32
    %c0_i32_0 = arith.constant 0 : i32
    %c0_i32_1 = arith.constant 0 : i32
    return %arg0, %c0_i32, %c0_i32_0 : i32, i32, i32
  }
}

</mosaic_0001>

<bundles_post_ra>
// kernel: conv_lstm_cell.1
= control target key start
LH: loop header
LB: loop body
LE: loop exit
PB: predicated region body
PF: predicated region fallthrough
CT: control target
= control target key end

     0   :  { %s4749_s21 = smov 0   ;;  %s6104_s0 = inlined_call_operand.vmem [shape: f32[2,4,256], index: 0, kind: input, shape index: {}]   ;;  %s6105_s1 = inlined_call_operand.vmem [shape: f32[2,32,256], index: 1, kind: input, shape index: {}]   ;;  %s6106_s2 = inlined_call_operand.vmem [shape: f32[2,32,256], index: 2, kind: input, shape index: {}]   ;;  %s6107_s3 = inlined_call_operand.vmem [shape: f32[9,128,36], index: 3, kind: input, shape index: {}]   ;;  %s6108_s4 = inlined_call_operand.vmem [shape: f32[128,1], index: 4, kind: input, shape index: {}]   ;;  %s6109_s5 = inlined_call_operand.vmem [shape: f32[2,32,256], index: 5, kind: output, shape index: {0}]   ;;  %s6110_s6 = inlined_call_operand.vmem [shape: f32[2,32,256], index: 6, kind: output, shape index: {1}]  }
   0x1 LB: > { %s3701_s22 = sadd.s32 4294967295, %s4702_s21   ;;  %p3705_p0 = scmp.ge.s32.totalorder %s4702_s21, 1  ;;  %s4702_s21 = sphi %s4749_s21, %s17_s21  }
   0x2   : > { %p235_p1 = scmp.lt.s32.totalorder %s4702_s21, 3 }
   0x4   : > { %p236_p2 = pnand %p3705_p0, %p235_p1 }
   0x5   : > { %p280_p3 = scmp.lt.s32.totalorder (!%p236_p2), %s3701_s22, 1  ;;  %v337_v0 = vlaneseq (!%p236_p2)  ;;  %v4704_v1 = vmov (!%p236_p2), 0.0   ;;  %s4705_s23 = smov (!%p236_p2), 16   ;;  %vm642_vm4 = vcmask (!%p236_p2), 1043456   ;;  %vm593_vm5 = vcmask (!%p236_p2), 293888   ;;  %v3840_v60 = vld [vmem:[%s6107_s3 + $0x200] sm:$0xff] (!%p236_p2) }
   0x6   : > { %239 = sbr.rel (%p236_p2) target bundleno = 683 (0x2ab), region = 40  ;;  %305 = vst [vmem:[#allocation2] sm:$0xff] (!%p236_p2), %v4704_v1  ;;  %309 = vst [vmem:[#allocation2 + $0x80] sm:$0xf] (!%p236_p2), %v4704_v1  ;;  %1870 = vmatprep.mubr.f32.mxu0 (!%p236_p2), %v4704_v1  ;;  %711 = vmatprep.mubr.f32.mxu1 (!%p236_p2), %v4704_v1  ;;  %s4706_s8 = smov (!%p236_p2), 127   ;;  %v3841_v63 = vld [vmem:[%s6107_s3 + $0x208] sm:$0xff] (!%p236_p2) }
   0x7   : > { %314 = vst [vmem:[#allocation2 + $0x98] sm:$0xf] (!%p236_p2), %v4704_v1  ;;  %320 = vst [vmem:[#allocation2 + $0x120] sm:$0xf] (!%p236_p2), %v4704_v1  ;;  %v338_v2 = vand.u32 (!%p236_p2), 127, %v337_v0  ;;  %4370 = vrot.lane.b32.xlu1 (!%p236_p2), %v4704_v1, %s4705_s23  ;;  %s4707_s17 = smov (!%p236_p2), 17  }
   0x8   : > { %325 = vst [vmem:[#allocation2 + $0x138] sm:$0xf] (!%p236_p2), %v4704_v1  ;;  %331 = vst [vmem:[#allocation2 + $0x1c0] sm:$0xf] (!%p236_p2), %v4704_v1  ;;  %s4709_s29 = smov (!%p236_p2), 15   ;;  %s4710_s30 = smov (!%p236_p2), 112  }
   0x9   : > { %336 = vst [vmem:[#allocation2 + $0x1d8] sm:$0xf] (!%p236_p2), %v4704_v1  ;;  %v344_v3 = vand.u32 (!%p236_p2), 15, %v338_v2  ;;  %v339_v4 = vadd.s32 (!%p236_p2), 128, %v338_v2  ;;  %vm574_vm6 = vcmask (!%p236_p2), 130048   ;;  %vm2076_vm7 = vcmask (!%p236_p2), 1039360  }
   0xa   : > { %vm853_vm8 = vcmask (!%p236_p2), 138240   ;;  %vm2417_vm9 = vcmask (!%p236_p2), 924672   ;;  %vm1162_vm10 = vcmask (!%p236_p2), 121856   ;;  %vm2758_vm11 = vcmask (!%p236_p2), 916480  }
   0xb   : > { %vm370_vm0 = vcmp.ne.s32.totalorder (!%p236_p2), %v344_v3, 0  ;;  %v351_v8 = vand.u32 (!%p236_p2), 15, %v339_v4  ;;  %vm364_vm1 = vcmp.ne.s32.totalorder (!%p236_p2), %v344_v3, 15  ;;  %v3842_v4 = vld [vmem:[%s6107_s3 + $0x210] sm:$0xff] (!%p236_p2)  ;;  %vm1473_vm12 = vcmask (!%p236_p2), 7168  }
   0xc   : > { %v3718_v13 = vsel (!%p236_p2), %vm370_vm0, 1.0, %v4704_v1  ;;  %v3716_v20 = vsel (!%p236_p2), %vm364_vm1, 1.0, %v4704_v1  ;;  %vm3069_vm13 = vcmask (!%p236_p2), 908288  }
   0xd   : > { %s6112_s22 = smov (!%p280_p3, %s3701_s22), 1  ;;  %vm371_vm2 = vcmp.ne.s32.totalorder %v351_v8, 0  ;;  %vm365_vm3 = vcmp.ne.s32.totalorder %v351_v8, 15  ;;  %v509_v54 = vld [vmem:[#allocation2 + $0x80] sm:$0xf] }
   0xe   : > { %s4768_s24 = sshll.u32 %s6112_s22, 6  ;;  %s4012_s25 = sshll.u32 %s6112_s22, 3  ;;  %v3719_v24 = vsel %vm371_vm2, 1.0, %v4704_v1  ;;  %v3717_v31 = vsel %vm365_vm3, 1.0, %v4704_v1 }
   0xf   : > { %s289_s28 = scalar_lea.vmem %s6105_s1, %s4768_s24  ;;  %s284_s7 = scalar_lea.vmem %s6104_s0, %s4012_s25  ;;  %v458_v30 = vcombine.low %v3718_v13, %v3719_v24  ;;  %v432_v43 = vcombine.low %v3716_v20, %v3717_v31 }
  0x10   : > { %v4777_v5 = vld [vmem:[%s289_s28] sm:$0xff]  ;;  %v4779_v6 = vld [vmem:[%s289_s28 + $0x8] sm:$0xff]  ;;  %v4787_v11 = vld [vmem:[%s289_s28 + $0x10] sm:$0xff]  ;;  %s6067_s10 = scalar_lea.vmem %s6110_s6, %s4768_s24  ;;  %s6089_s13 = scalar_lea.vmem %s6109_s5, %s4768_s24 }
  0x11   : > { %v4781_v7 = vld [vmem:[%s289_s28 + $0x20] sm:$0xff]  ;;  %v4374_v9 = vpack.i.bf16 %v4779_v6, %v4777_v5  ;;  %v4785_v10 = vld [vmem:[%s289_s28 + $0x28] sm:$0xff]  ;;  %v4789_v12 = vld [vmem:[%s289_s28 + $0x18] sm:$0xff]  ;;  %v4799_v18 = vmul.f32 %v3718_v13, %v4777_v5  ;;  %v4802_v19 = vmul.f32 %v3718_v13, %v4787_v11  ;;  %v4817_v26 = vmul.f32 %v3719_v24, %v4779_v6 }
  0x12   : > { %v4384_v14 = vpack.i.bf16 %v4785_v10, %v4781_v7  ;;  %v4794_v15 = vld [vmem:[%s289_s28 + $0x30] sm:$0xff]  ;;  %v4796_v16 = vld [vmem:[%s289_s28 + $0x38] sm:$0xff]  ;;  %v400_v17 = vld [vmem:[%s284_s7] sm:$0xff]  ;;  %v4379_v21 = vpack.i.bf16 %v4789_v12, %v4787_v11  ;;  %v4809_v23 = vmul.f32 %v3718_v13, %v4781_v7  ;;  %v4820_v27 = vmul.f32 %v3719_v24, %v4789_v12  ;;  %s4708_s28 = smov 113   ;;  %s4711_s7 = smov 1  }
  0x13   : > { %4375 = vrot.lane.b32.xlu0 %v4374_v9, %s4705_s23  ;;  %v410_v22 = vcombine.high %v400_v17, %v400_v17  ;;  %412 = vst [vmem:[#allocation2 + $0x88] sm:$0xf] %v400_v17  ;;  %v4814_v25 = vmul.f32 %v3718_v13, %v4794_v15  ;;  %v4823_v28 = vmul.f32 %v3719_v24, %v4796_v16  ;;  %v4947_v8 = vld [vmem:[#allocation2 + $0x1d8] sm:$0xf] }
  0x14   : > { %4385 = vrot.lane.b32.xlu1 %v4384_v14, %s4705_s23  ;;  %v4826_v29 = vmul.f32 %v3719_v24, %v4785_v10  ;;  %v4830_v32 = vmul.f32 %v3716_v20, %v4777_v5  ;;  %v4394_v33 = vpack.i.bf16 %v4796_v16, %v4794_v15  ;;  %v460_v34 = vmul.f32 %v458_v30, %v400_v17  ;;  %v3843_v13 = vld [vmem:[%s6107_s3 + $0x218] sm:$0xff]  ;;  %v3846_v30 = vld [vmem:[%s6107_s3 + $0x230] sm:$0xff] }
  0x15   : > { %413 = vst [vmem:[#allocation2 + $0x90] sm:$0xf] %v410_v22  ;;  %v4838_v35 = vmul.f32 %v3717_v31, %v4779_v6  ;;  %v4841_v36 = vmul.f32 %v3716_v20, %v4787_v11  ;;  %v4844_v37 = vmul.f32 %v3717_v31, %v4789_v12  ;;  %v4847_v38 = vmul.f32 %v3716_v20, %v4781_v7 }
  0x16   : > { %v4850_v39 = vmul.f32 %v3717_v31, %v4785_v10  ;;  %v4853_v40 = vmul.f32 %v3716_v20, %v4794_v15  ;;  %v4856_v41 = vmul.f32 %v3717_v31, %v4796_v16  ;;  %v462_v42 = vcombine.high %v460_v34, %v460_v34  ;;  %464 = vst [vmem:[#allocation2 + $0x1c8] sm:$0xf] %v460_v34  ;;  %v3844_v20 = vld [vmem:[%s6107_s3 + $0x220] sm:$0xff]  ;;  %v3847_v34 = vld [vmem:[%s6107_s3 + $0x238] sm:$0xff] }
  0x17   : > { %4380 = vrot.lane.b32.xlu0 %v4379_v21, %s4705_s23  ;;  %v434_v46 = vmul.f32 %v432_v43, %v400_v17  ;;  %v4862_v47 = vpack.i.bf16 %v4802_v19, %v4799_v18  ;;  %v4489_v48 = vpack.i.bf16 %v4817_v26, %v4799_v18  ;;  %v4494_v49 = vpack.i.bf16 %v4820_v27, %v4802_v19  ;;  %v3845_v21 = vld [vmem:[%s6107_s3 + $0x228] sm:$0xff] }
  0x18   : > { %4390 = vrot.lane.b32.xlu1 %v4704_v1, %s4705_s23  ;;  %465 = vst [vmem:[#allocation2 + $0x1d0] sm:$0xf] %v462_v42  ;;  %v4870_v50 = vpack.c.bf16 %v4789_v12, %v4779_v6  ;;  %v4874_v52 = vpack.c.bf16 %v4787_v11, %v4777_v5  ;;  %v4878_v53 = vpack.c.bf16 %v4796_v16, %v4785_v10  ;;  %v5016_v42 = vld [vmem:[#allocation2 + $0x120] sm:$0xf] }
  0x19   : > { %438 = vst [vmem:[#allocation2 + $0x128] sm:$0xf] %v434_v46  ;;  %v436_v51 = vcombine.high %v434_v46, %v434_v46  ;;  %v4885_v55 = vpack.c.bf16 %v4794_v15, %v4781_v7  ;;  %v4529_v56 = vpack.i.bf16 %v4787_v11, %v4777_v5  ;;  %v4893_v57 = vpack.i.bf16 %v4704_v1, %v4817_v26 }
  0x1a   : > { %v510_v45 = vld [vmem:[#allocation2 + $0x88] sm:$0xf]  ;;  %4050 = vmatprep.subr.bf16.mxu0 %v4870_v50  ;;  %v4899_v58 = vpack.i.bf16 %v4704_v1, %v4820_v27  ;;  %v4906_v59 = vpack.i.bf16 %v4704_v1, %v4823_v28  ;;  %v4916_v61 = vpack.i.bf16 %v4704_v1, %v4826_v29  ;;  %v4544_v0 = vpack.i.bf16 %v4794_v15, %v4781_v7 }
  0x1b   : > { %4395 = vrot.lane.b32.xlu0 %v4394_v33, %s4705_s23  ;;  %439 = vst [vmem:[#allocation2 + $0x130] sm:$0xf] %v436_v51  ;;  %4052 = vmatpush1.bf16.msra.mxu0 %v4874_v52  ;;  %v4934_v2 = vpack.i.bf16 %v4814_v25, %v4809_v23  ;;  %v4953_v9 = vpack.i.bf16 %v4844_v37, %v4841_v36  ;;  %v2354_v51 = vld [vmem:[#allocation2 + $0x138] sm:$0xf]  ;;  %v2693_v27 = vld [vmem:[#allocation2 + $0x88] sm:$0xf] }
  0x1c   : > { %v511_v44 = vld [vmem:[#allocation2 + $0x90] sm:$0xf]  ;;  %4054 = vmatprep.subr.bf16.mxu0 %v4878_v53  ;;  %v4964_v14 = vpack.i.bf16 %v4838_v35, %v4830_v32  ;;  %v4970_v17 = vpack.i.bf16 %v4850_v39, %v4847_v38  ;;  %v4990_v22 = vpack.i.bf16 %v4856_v41, %v4853_v40  ;;  %v4459_v33 = vpack.i.bf16 %v4704_v1, %v4838_v35 }
  0x1d   : > { %572 = vrot.lane.b32.xlu1 %v511_v44, %s4705_s23  ;;  %v4939_v3 = vld [vmem:[#allocation2 + $0x1c8] sm:$0xf]  ;;  %v4469_v43 = vpack.i.bf16 %v4841_v36, %v4830_v32  ;;  %v4464_v35 = vpack.i.bf16 %v4704_v1, %v4844_v37  ;;  %v4484_v36 = vpack.i.bf16 %v4853_v40, %v4847_v38  ;;  %v4504_v37 = vpack.i.bf16 %v4826_v29, %v4809_v23  ;;  %v1097_v23 = vld [vmem:[#allocation2 + $0x1c0] sm:$0xf] }
  0x1e   : > { %v4509_v38 = vpack.i.bf16 %v4823_v28, %v4814_v25  ;;  %v1098_v40 = vld [vmem:[#allocation2 + $0x1c8] sm:$0xf]  ;;  %v4519_v19 = vpack.i.bf16 %v4704_v1, %v4779_v6  ;;  %v4524_v18 = vpack.i.bf16 %v4704_v1, %v4789_v12  ;;  %v4539_v25 = vpack.i.bf16 %v4704_v1, %v4796_v16  ;;  %v2694_v6 = vld [vmem:[#allocation2 + $0x90] sm:$0xf]  ;;  %v2695_v12 = vld [vmem:[#allocation2 + $0x98] sm:$0xf] }
  0x1f   : > { %570 = vrot.lane.b32.xlu0 %v510_v45, %s4705_s23  ;;  %4056 = vmatpush1.bf16.msra.mxu0 %v4885_v55  ;;  %v4922_v62 = vld [vmem:[#allocation2 + $0x1d0] sm:$0xf]  ;;  %v4534_v26 = vpack.i.bf16 %v4704_v1, %v4785_v10 }
  0x20   : > { %3856 = vmatprep.subr.msk.mxu0 %vm642_vm4, %v511_v44  ;;  %v5003_v31 = vld [vmem:[#allocation2 + $0x128] sm:$0xf]  ;;  %v4479_v44 = vpack.i.bf16 %v4704_v1, %v4856_v41 }
  0x21   : > { %4400 = vrot.lane.b32.xlu1 %v4862_v47, %s4706_s8  ;;  %v2352_v46 = vld [vmem:[#allocation2 + $0x128] sm:$0xf] }
  0x22   : > { %v4995_v24 = vld [vmem:[#allocation2 + $0x130] sm:$0xf] }
  0x23   : > { %568 = vrot.lane.b32.xlu0 %v509_v54, %s4705_s23  ;;  %3857 = vmatpush1.msk.msra.mxu0 %vm642_vm4, %v510_v45  ;;  %v4474_v45 = vpack.i.bf16 %v4704_v1, %v4850_v39  ;;  %v2353_v32 = vld [vmem:[#allocation2 + $0x130] sm:$0xf] }
  0x24   : > { %3858 = vmatmul.mubr.msk.f32.vlgmr.msra.gmra.mrb[0].mxu0 %vm593_vm5, %v3840_v60  ;;  %v1099_v39 = vld [vmem:[#allocation2 + $0x1d0] sm:$0xf] }
  0x25   : > { %4405 = vrot.lane.b32.xlu1 %v4893_v57, %s4706_s8  ;;  %1876 = vmatprep.mubr.f32.mxu0 %v4704_v1 }
  0x27   : > { %4410 = vrot.lane.b32.xlu0 %v4899_v58, %s4706_s8 }
  0x28   : > { %3859 = vmatmul.mubr.msk.f32.gmra.mrb[2].mxu0 %vm593_vm5, %v3841_v63 }
  0x29   : > { %4420 = vrot.lane.b32.xlu1 %v4906_v59, %s4706_s8  ;;  %1882 = vmatprep.mubr.f32.mxu0 %v4704_v1 }
  0x2b   : > { %4415 = vrot.lane.b32.xlu0 %v4916_v61, %s4706_s8 }
  0x2c   : > { %3860 = vmatmul.mubr.msk.f32.gmra.mrb[4].mxu0 %vm593_vm5, %v3842_v4 }
  0x2d   : > { %2072 = vrot.lane.b32.xlu1 %v4922_v62, %s4706_s8  ;;  %1888 = vmatprep.mubr.f32.mxu0 %v4704_v1 }
  0x2f   : > { %4425 = vrot.lane.b32.xlu0 %v4934_v2, %s4706_s8 }
  0x30   : > { %3861 = vmatmul.mubr.msk.f32.gmra.mrb[6].mxu0 %vm593_vm5, %v3843_v13 }
  0x31   : > { %2070 = vrot.lane.b32.xlu1 %v4939_v3, %s4706_s8  ;;  %1894 = vmatprep.mubr.f32.mxu0 %v4704_v1 }
  0x33   : > { %2074 = vrot.lane.b32.xlu0 %v4947_v8, %s4706_s8  ;;  %s4712_s8 = smov 111  }
  0x34   : > { %3862 = vmatmul.mubr.msk.f32.gmra.mrb[8].mxu0 %vm593_vm5, %v3844_v20 }
  0x35   : > { %4435 = vrot.lane.b32.xlu1 %v4953_v9, %s4707_s17  ;;  %1900 = vmatprep.mubr.f32.mxu0 %v4704_v1 }
  0x37   : > { %4430 = vrot.lane.b32.xlu0 %v4964_v14, %s4707_s17 }
  0x38   : > { %3863 = vmatmul.mubr.msk.f32.gmra.mrb[10].mxu0 %vm593_vm5, %v3845_v21 }
  0x39   : > { %4445 = vrot.lane.b32.xlu1 %v4970_v17, %s4707_s17  ;;  %1906 = vmatprep.mubr.f32.mxu0 %v4704_v1 }
  0x3b   : > { %4440 = vrot.lane.b32.xlu0 %v4704_v1, %s4707_s17 }
  0x3c   : > { %3864 = vmatmul.mubr.msk.f32.gmra.mrb[12].mxu0 %vm593_vm5, %v3846_v30 }
  0x3d   : > { %4455 = vrot.lane.b32.xlu1 %v4704_v1, %s4707_s17  ;;  %1912 = vmatprep.mubr.f32.mxu0 %v4704_v1 }
  0x3f   : > { %4450 = vrot.lane.b32.xlu0 %v4990_v22, %s4707_s17 }
  0x40   : > { %3865 = vmatmul.mubr.msk.f32.gmra.mrb[14].mxu0 %vm593_vm5, %v3847_v34 }
  0x41   : > { %851 = vrot.lane.b32.xlu1 %v4995_v24, %s4707_s17  ;;  %2211 = vmatprep.mubr.f32.mxu0 %v4704_v1 }
  0x43   : > { %849 = vrot.lane.b32.xlu0 %v5003_v31, %s4707_s17 }
  0x45   : > { %4460 = vrot.lane.b32.xlu1 %v4459_v33, %s4708_s28 }
  0x47   : > { %847 = vrot.lane.b32.xlu0 %v5016_v42, %s4707_s17 }
  0x49   : > { %4470 = vrot.lane.b32.xlu1 %v4469_v43, %s4708_s28 }
  0x4b   : > { %4465 = vrot.lane.b32.xlu0 %v4464_v35, %s4708_s28 }
  0x4d   : > { %4480 = vrot.lane.b32.xlu1 %v4479_v44, %s4708_s28 }
  0x4f   : > { %4475 = vrot.lane.b32.xlu0 %v4474_v45, %s4708_s28 }
  0x51   : > { %2413 = vrot.lane.b32.xlu1 %v2353_v32, %s4708_s28 }
  0x53   : > { %4485 = vrot.lane.b32.xlu0 %v4484_v36, %s4708_s28 }
  0x55   : > { %2411 = vrot.lane.b32.xlu1 %v2352_v46, %s4708_s28 }
  0x57   : > { %2415 = vrot.lane.b32.xlu0 %v2354_v51, %s4708_s28 }
  0x59   : > { %4495 = vrot.lane.b32.xlu1 %v4494_v49, %s4709_s29 }
  0x5b   : > { %4490 = vrot.lane.b32.xlu0 %v4489_v48, %s4709_s29 }
  0x5d   : > { %4505 = vrot.lane.b32.xlu1 %v4504_v37, %s4709_s29 }
  0x5f   : > { %4500 = vrot.lane.b32.xlu0 %v4704_v1, %s4709_s29 }
  0x61   : > { %4515 = vrot.lane.b32.xlu1 %v4704_v1, %s4709_s29 }
  0x63   : > { %4510 = vrot.lane.b32.xlu0 %v4509_v38, %s4709_s29 }
  0x65   : > { %1160 = vrot.lane.b32.xlu1 %v1099_v39, %s4709_s29 }
  0x67   : > { %1158 = vrot.lane.b32.xlu0 %v1098_v40, %s4709_s29 }
  0x69   : > { %4520 = vrot.lane.b32.xlu1 %v4519_v19, %s4710_s30 }
  0x6b   : > { %1156 = vrot.lane.b32.xlu0 %v1097_v23, %s4709_s29 }
  0x6d   : > { %4530 = vrot.lane.b32.xlu1 %v4529_v56, %s4710_s30 }
  0x6f   : > { %4525 = vrot.lane.b32.xlu0 %v4524_v18, %s4710_s30 }
  0x71   : > { %4540 = vrot.lane.b32.xlu1 %v4539_v25, %s4710_s30 }
  0x73   : > { %4535 = vrot.lane.b32.xlu0 %v4534_v26, %s4710_s30 }
  0x75   : > { %2754 = vrot.lane.b32.xlu1 %v2694_v6, %s4710_s30 }
  0x77   : > { %4545 = vrot.lane.b32.xlu0 %v4544_v0, %s4710_s30 }
  0x79   : > { %2752 = vrot.lane.b32.xlu1 %v2693_v27, %s4710_s30  ;;  %v4371_v5 = vpop.permute.xlu1 %4370 }
  0x7a   : > { %v4372_v11 = vunpack.i.l.bf16 %v4371_v5  ;;  %v4373_v29 = vunpack.i.h.bf16 %v4371_v5 }
  0x7b   : > { %2756 = vrot.lane.b32.xlu0 %v2695_v12, %s4710_s30 }
  0x7d   : > { %4555 = vrot.lane.b32.xlu1 %v4953_v9, %s4711_s7 }
  0x7f   : > { %4550 = vrot.lane.b32.xlu0 %v4964_v14, %s4711_s7 }
  0x81   : > { %4565 = vrot.lane.b32.xlu1 %v4970_v17, %s4711_s7 }
  0x83   : > { %4560 = vrot.lane.b32.xlu0 %v4704_v1, %s4711_s7 }
  0x85   : > { %v4376_v10 = vpop.permute.xlu0 %4375  ;;  %4575 = vrot.lane.b32.xlu1 %v4704_v1, %s4711_s7 }
  0x86   : > { %v4386_v7 = vpop.permute.xlu1 %4385  ;;  %v4378_v15 = vunpack.i.h.bf16 %v4376_v10  ;;  %v4377_v16 = vunpack.i.l.bf16 %v4376_v10 }
  0x87   : > { %4570 = vrot.lane.b32.xlu0 %v4990_v22, %s4711_s7  ;;  %v4388_v54 = vunpack.i.h.bf16 %v4386_v7  ;;  %v4387_v56 = vunpack.i.l.bf16 %v4386_v7 }
  0x88   : > { %v576_v60 = vsel %vm574_vm6, %v4377_v16, %v4378_v15  ;;  %v575_v63 = vsel %vm574_vm6, %v4372_v11, %v4377_v16 }
  0x89   : > { %v4381_v28 = vpop.permute.xlu0 %4380  ;;  %1471 = vrot.lane.b32.xlu1 %v4995_v24, %s4711_s7  ;;  %v580_v30 = vsel %vm574_vm6, %v4387_v56, %v4388_v54 }
  0x8a   : > { %v4383_v41 = vunpack.i.h.bf16 %v4381_v28  ;;  %v4382_v48 = vunpack.i.l.bf16 %v4381_v28  ;;  %v4391_v49 = vpop.permute.xlu1 %4390 }
  0x8b   : > { %1469 = vrot.lane.b32.xlu0 %v5003_v31, %s4711_s7  ;;  %v4393_v0 = vunpack.i.h.bf16 %v4391_v49  ;;  %v4392_v4 = vunpack.i.l.bf16 %v4391_v49 }
  0x8c   : > { %v578_v9 = vsel %vm574_vm6, %v4382_v48, %v4383_v41  ;;  %v577_v13 = vsel %vm574_vm6, %v4373_v29, %v4382_v48  ;;  %v3723_v41 = vld [vmem:[%s6107_s3 + $0x98] sm:$0xff] }
  0x8d   : > { %v4396_v14 = vpop.permute.xlu0 %4395  ;;  %v4017_v17 = vpack.c.bf16 %v578_v9, %v576_v60  ;;  %v4019_v20 = vpack.c.bf16 %v577_v13, %v575_v63  ;;  %4580 = vrot.lane.b32.xlu1 %v4893_v57, %s4712_s8  ;;  %v579_v33 = vsel %vm574_vm6, %v4392_v4, %v4387_v56  ;;  %v3724_v63 = vld [vmem:[%s6107_s3 + $0xa0] sm:$0xff] }
  0x8e   : > { %v4398_v21 = vunpack.i.h.bf16 %v4396_v14  ;;  %v4397_v22 = vunpack.i.l.bf16 %v4396_v14 }
  0x8f   : > { %4018 = vmatprep.subr.bf16.mxu1 %v4017_v17  ;;  %v573_v24 = vpop.permute.xlu1 %572  ;;  %1467 = vrot.lane.b32.xlu0 %v5016_v42, %s4711_s7  ;;  %v3874_v17 = vld [vmem:[%s6107_s3 + $0x280] sm:$0xff]  ;;  %s6028_s7 = scalar_lea.vmem %s6106_s2, %s4768_s24 }
  0x90   : > { %4020 = vmatpush1.bf16.msra.mxu1 %v4019_v20  ;;  %v582_v31 = vsel %vm574_vm6, %v4397_v22, %v4398_v21  ;;  %v581_v34 = vsel %vm574_vm6, %v4393_v0, %v4397_v22  ;;  %v3725_v22 = vld [vmem:[%s6107_s3 + $0xa8] sm:$0xff] }
  0x91   : > { %v571_v43 = vpop.permute.xlu0 %570  ;;  %v4021_v35 = vpack.c.bf16 %v582_v31, %v580_v30  ;;  %v4023_v44 = vpack.c.bf16 %v581_v34, %v579_v33  ;;  %4590 = vrot.lane.b32.xlu1 %v4862_v47, %s4712_s8  ;;  %v3720_v47 = vld [vmem:[%s6107_s3 + $0x80] sm:$0xff] }
  0x92   : > { %v584_v57 = vsel %vm574_vm6, %v571_v43, %v573_v24 }
  0x93   : > { %4022 = vmatprep.subr.bf16.mxu1 %v4021_v35  ;;  %v4401_v45 = vpop.permute.xlu1 %4400  ;;  %4585 = vrot.lane.b32.xlu0 %v4899_v58, %s4712_s8 }
  0x94   : > { %4024 = vmatpush1.bf16.msra.mxu1 %v4023_v44  ;;  %v4402_v32 = vunpack.i.l.bf16 %v4401_v45  ;;  %v4403_v58 = vunpack.i.h.bf16 %v4401_v45 }
  0x95   : > { %v569_v42 = vpop.permute.xlu0 %568  ;;  %3736 = vmatprep.subr.msk.mxu1 %vm642_vm4, %v584_v57  ;;  %4600 = vrot.lane.b32.xlu1 %v4906_v59, %s4712_s8  ;;  %v3726_v57 = vld [vmem:[%s6107_s3 + $0xb0] sm:$0xff] }
  0x96   : > { %v583_v36 = vsel %vm574_vm6, %v569_v42, %v571_v43  ;;  %v3875_v43 = vld [vmem:[%s6107_s3 + $0x288] sm:$0xff] }
  0x97   : > { %v4406_v46 = vpop.permute.xlu1 %4405  ;;  %4595 = vrot.lane.b32.xlu0 %v4916_v61, %s4712_s8  ;;  %v3721_v61 = vld [vmem:[%s6107_s3 + $0x88] sm:$0xff] }
  0x98   : > { %3737 = vmatpush1.msk.msra.mxu1 %vm642_vm4, %v583_v36  ;;  %v4408_v51 = vunpack.i.h.bf16 %v4406_v46  ;;  %v4407_v37 = vunpack.i.l.bf16 %v4406_v46 }
  0x99   : > { %v4411_v38 = vpop.permute.xlu0 %4410  ;;  %3738 = vmatmul.mubr.msk.f32.vlgmr.msra.gmra.mrb[0].mxu1 %vm593_vm5, %v3720_v47  ;;  %3065 = vrot.lane.b32.xlu1 %v4922_v62, %s4712_s8 }
  0x9a   : > { %v2077_v59 = vsel %vm2076_vm7, %v4402_v32, %v4407_v37  ;;  %v4413_v39 = vunpack.i.h.bf16 %v4411_v38  ;;  %v4412_v40 = vunpack.i.l.bf16 %v4411_v38  ;;  %717 = vmatprep.mubr.f32.mxu1 %v4704_v1  ;;  %v2078_v19 = vsel %vm2076_vm7, %v4407_v37, %v4408_v51  ;;  %v3876_v37 = vld [vmem:[%s6107_s3 + $0x290] sm:$0xff] }
  0x9b   : > { %v4421_v23 = vpop.permute.xlu1 %4420  ;;  %4605 = vrot.lane.b32.xlu0 %v4934_v2, %s4712_s8  ;;  %v3722_v2 = vld [vmem:[%s6107_s3 + $0x90] sm:$0xff] }
  0x9c   : > { %v2079_v18 = vsel %vm2076_vm7, %v4403_v58, %v4412_v40  ;;  %v4423_v25 = vunpack.i.h.bf16 %v4421_v23  ;;  %v4422_v62 = vunpack.i.l.bf16 %v4421_v23  ;;  %v2080_v26 = vsel %vm2076_vm7, %v4412_v40, %v4413_v39 }
  0x9d   : > { %v4059_v6 = vpack.c.bf16 %v2079_v18, %v2077_v59  ;;  %v4416_v27 = vpop.permute.xlu0 %4415  ;;  %3739 = vmatmul.mubr.msk.f32.gmra.mrb[2].mxu1 %vm593_vm5, %v3721_v61  ;;  %v4057_v12 = vpack.c.bf16 %v2080_v26, %v2078_v19  ;;  %3063 = vrot.lane.b32.xlu1 %v4939_v3, %s4712_s8  ;;  %v3727_v59 = vld [vmem:[%s6107_s3 + $0xb8] sm:$0xff] }
  0x9e   : > { %v4418_v5 = vunpack.i.h.bf16 %v4416_v27  ;;  %v4417_v10 = vunpack.i.l.bf16 %v4416_v27  ;;  %723 = vmatprep.mubr.f32.mxu1 %v4704_v1  ;;  %v2084_v7 = vsel %vm2076_vm7, %v4422_v62, %v4423_v25 }
  0x9f   : > { %4058 = vmatprep.subr.bf16.mxu0 %v4057_v12  ;;  %v2073_v11 = vpop.permute.xlu1 %2072  ;;  %3067 = vrot.lane.b32.xlu0 %v4947_v8, %s4712_s8  ;;  %v3728_v12 = vld [vmem:[%s6107_s3 + $0xc0] sm:$0xff] }
  0xa0   : > { %4060 = vmatpush1.bf16.msra.mxu0 %v4059_v6  ;;  %v2082_v15 = vsel %vm2076_vm7, %v4417_v10, %v4418_v5 }
  0xa1   : > { %v4426_v16 = vpop.permute.xlu0 %4425  ;;  %3740 = vmatmul.mubr.msk.f32.gmra.mrb[4].mxu1 %vm593_vm5, %v3722_v2  ;;  %v4061_v3 = vpack.c.bf16 %v2084_v7, %v2082_v15  ;;  %v3878_v2 = vld [vmem:[%s6107_s3 + $0x2a0] sm:$0xff] }
  0xa2   : > { %v4428_v28 = vunpack.i.h.bf16 %v4426_v16  ;;  %v4427_v29 = vunpack.i.l.bf16 %v4426_v16  ;;  %729 = vmatprep.mubr.f32.mxu1 %v4704_v1 }
  0xa3   : > { %4062 = vmatprep.subr.bf16.mxu0 %v4061_v3  ;;  %v2071_v48 = vpop.permute.xlu1 %2070 }
  0xa4   : > { %v2081_v49 = vsel %vm2076_vm7, %v4427_v29, %v4417_v10  ;;  %v2083_v8 = vsel %vm2076_vm7, %v4428_v28, %v4422_v62  ;;  %v2085_v4 = vsel %vm2076_vm7, %v2071_v48, %v2073_v11  ;;  %v3877_v62 = vld [vmem:[%s6107_s3 + $0x298] sm:$0xff]  ;;  %v3879_v48 = vld [vmem:[%s6107_s3 + $0x2a8] sm:$0xff] }
  0xa5   : > { %v4063_v54 = vpack.c.bf16 %v2083_v8, %v2081_v49  ;;  %v2075_v56 = vpop.permute.xlu0 %2074  ;;  %3741 = vmatmul.mubr.msk.f32.gmra.mrb[6].mxu1 %vm593_vm5, %v3723_v41  ;;  %v3730_v8 = vld [vmem:[%s6107_s3 + $0xd0] sm:$0xff] }
  0xa6   : > { %v2086_v60 = vsel %vm2076_vm7, %v2073_v11, %v2075_v56  ;;  %735 = vmatprep.mubr.f32.mxu1 %v4704_v1  ;;  %v3729_v11 = vld [vmem:[%s6107_s3 + $0xc8] sm:$0xff] }
  0xa7   : > { %4064 = vmatpush1.bf16.msra.mxu0 %v4063_v54  ;;  %v4436_v0 = vpop.permute.xlu1 %4435 }
  0xa8   : > { %3890 = vmatprep.subr.msk.mxu0 %vm642_vm4, %v2086_v60  ;;  %v4438_v9 = vunpack.i.h.bf16 %v4436_v0  ;;  %v4437_v13 = vunpack.i.l.bf16 %v4436_v0 }
  0xa9   : > { %v4431_v14 = vpop.permute.xlu0 %4430  ;;  %3742 = vmatmul.mubr.msk.f32.gmra.mrb[8].mxu1 %vm593_vm5, %v3724_v63 }
  0xaa   : > { %v4433_v20 = vunpack.i.h.bf16 %v4431_v14  ;;  %v4432_v21 = vunpack.i.l.bf16 %v4431_v14  ;;  %741 = vmatprep.mubr.f32.mxu1 %v4704_v1  ;;  %v857_v24 = vsel %vm853_vm8, %v4437_v13, %v4438_v9 }
  0xab   : > { %3891 = vmatpush1.msk.msra.mxu0 %vm642_vm4, %v2085_v4  ;;  %v4446_v30 = vpop.permute.xlu1 %4445 }
  0xac   : > { %3892 = vmatmul.mubr.msk.f32.vlgmr.msra.gmra.mrb[0].mxu0 %vm593_vm5, %v3874_v17  ;;  %v855_v31 = vsel %vm853_vm8, %v4432_v21, %v4433_v20  ;;  %v4448_v45 = vunpack.i.h.bf16 %v4446_v30  ;;  %v4447_v42 = vunpack.i.l.bf16 %v4446_v30  ;;  %v3880_v17 = vld [vmem:[%s6107_s3 + $0x2b0] sm:$0xff] }
  0xad   : > { %v4441_v33 = vpop.permute.xlu0 %4440  ;;  %3743 = vmatmul.mubr.msk.f32.gmra.mrb[10].mxu1 %vm593_vm5, %v3725_v22  ;;  %v4025_v34 = vpack.c.bf16 %v857_v24, %v855_v31  ;;  %2217 = vmatprep.mubr.f32.mxu0 %v4704_v1  ;;  %v3731_v22 = vld [vmem:[%s6107_s3 + $0xd8] sm:$0xff] }
  0xae   : > { %v4443_v35 = vunpack.i.h.bf16 %v4441_v33  ;;  %v4442_v44 = vunpack.i.l.bf16 %v4441_v33  ;;  %747 = vmatprep.mubr.f32.mxu1 %v4704_v1  ;;  %v859_v19 = vsel %vm853_vm8, %v4447_v42, %v4448_v45  ;;  %v3732_v45 = vld [vmem:[%s6107_s3 + $0xe0] sm:$0xff] }
  0xaf   : > { %4026 = vmatprep.subr.bf16.mxu1 %v4025_v34  ;;  %v4456_v32 = vpop.permute.xlu1 %4455 }
  0xb0   : > { %v854_v36 = vsel %vm853_vm8, %v4442_v44, %v4432_v21  ;;  %v856_v47 = vsel %vm853_vm8, %v4443_v35, %v4437_v13  ;;  %3893 = vmatmul.mubr.msk.f32.gmra.mrb[2].mxu0 %vm593_vm5, %v3875_v43  ;;  %v4458_v46 = vunpack.i.h.bf16 %v4456_v32  ;;  %v4457_v58 = vunpack.i.l.bf16 %v4456_v32  ;;  %v3881_v35 = vld [vmem:[%s6107_s3 + $0x2b8] sm:$0xff] }
  0xb1   : > { %v4027_v51 = vpack.c.bf16 %v856_v47, %v854_v36  ;;  %3744 = vmatmul.mubr.msk.f32.gmra.mrb[12].mxu1 %vm593_vm5, %v3726_v57  ;;  %2223 = vmatprep.mubr.f32.mxu0 %v4704_v1  ;;  %v4451_v38 = vpop.permute.xlu0 %4450 }
  0xb2   : > { %753 = vmatprep.mubr.f32.mxu1 %v4704_v1  ;;  %v4453_v39 = vunpack.i.h.bf16 %v4451_v38  ;;  %v4452_v40 = vunpack.i.l.bf16 %v4451_v38  ;;  %v858_v61 = vsel %vm853_vm8, %v4457_v58, %v4447_v42  ;;  %v3882_v58 = vld [vmem:[%s6107_s3 + $0x2c0] sm:$0xff]  ;;  %v3733_v38 = vld [vmem:[%s6107_s3 + $0xe8] sm:$0xff] }
  0xb3   : > { %4028 = vmatpush1.bf16.msra.mxu1 %v4027_v51  ;;  %v852_v23 = vpop.permute.xlu1 %851 }
  0xb4   : > { %3894 = vmatmul.mubr.msk.f32.gmra.mrb[4].mxu0 %vm593_vm5, %v3876_v37  ;;  %v860_v18 = vsel %vm853_vm8, %v4458_v46, %v4452_v40  ;;  %v861_v25 = vsel %vm853_vm8, %v4452_v40, %v4453_v39 }
  0xb5   : > { %3745 = vmatmul.mubr.msk.f32.gmra.mrb[14].mxu1 %vm593_vm5, %v3727_v59  ;;  %2229 = vmatprep.mubr.f32.mxu0 %v4704_v1  ;;  %v4031_v26 = vpack.c.bf16 %v860_v18, %v858_v61  ;;  %v850_v6 = vpop.permute.xlu0 %849  ;;  %v4029_v27 = vpack.c.bf16 %v861_v25, %v859_v19  ;;  %v3734_v25 = vld [vmem:[%s6107_s3 + $0xf0] sm:$0xff] }
  0xb6   : > { %759 = vmatprep.mubr.f32.mxu1 %v4704_v1  ;;  %v863_v5 = vsel %vm853_vm8, %v850_v6, %v852_v23  ;;  %v3883_v23 = vld [vmem:[%s6107_s3 + $0x2c8] sm:$0xff] }
  0xb7   : > { %4030 = vmatprep.subr.bf16.mxu1 %v4029_v27  ;;  %v4461_v10 = vpop.permute.xlu1 %4460 }
  0xb8   : > { %3895 = vmatmul.mubr.msk.f32.gmra.mrb[6].mxu0 %vm593_vm5, %v3877_v62  ;;  %4032 = vmatpush1.bf16.msra.mxu1 %v4031_v26  ;;  %v4463_v16 = vunpack.i.h.bf16 %v4461_v10  ;;  %v4462_v3 = vunpack.i.l.bf16 %v4461_v10 }
  0xb9   : > { %3746 = vmatmul.mubr.msk.f32.gmra.mrb[16].mxu1 %vm593_vm5, %v3728_v12  ;;  %2235 = vmatprep.mubr.f32.mxu0 %v4704_v1  ;;  %v848_v7 = vpop.permute.xlu0 %847 }
  0xba   : > { %765 = vmatprep.mubr.f32.mxu1 %v4704_v1  ;;  %v862_v15 = vsel %vm853_vm8, %v848_v7, %v850_v6  ;;  %3754 = vmatprep.subr.msk.mxu1 %vm642_vm4, %v863_v5  ;;  %v2419_v60 = vsel %vm2417_vm9, %v4462_v3, %v4463_v16  ;;  %v3884_v5 = vld [vmem:[%s6107_s3 + $0x2d0] sm:$0xff]  ;;  %v3735_v7 = vld [vmem:[%s6107_s3 + $0xf8] sm:$0xff] }
  0xbb   : > { %v4471_v28 = vpop.permute.xlu1 %4470 }
  0xbc   : > { %3896 = vmatmul.mubr.msk.f32.gmra.mrb[8].mxu0 %vm593_vm5, %v3878_v2  ;;  %3755 = vmatpush1.msk.msra.mxu1 %vm642_vm4, %v862_v15  ;;  %v4473_v29 = vunpack.i.h.bf16 %v4471_v28  ;;  %v4472_v41 = vunpack.i.l.bf16 %v4471_v28 }
  0xbd   : > { %3747 = vmatmul.mubr.msk.f32.gmra.mrb[18].mxu1 %vm593_vm5, %v3729_v11  ;;  %2241 = vmatprep.mubr.f32.mxu0 %v4704_v1  ;;  %v4466_v49 = vpop.permute.xlu0 %4465 }
  0xbe   : > { %771 = vmatprep.mubr.f32.mxu1 %v4704_v1  ;;  %v4468_v54 = vunpack.i.h.bf16 %v4466_v49  ;;  %v4467_v56 = vunpack.i.l.bf16 %v4466_v49  ;;  %v2418_v63 = vsel %vm2417_vm9, %v4472_v41, %v4462_v3 }
  0xbf   : > { %v4481_v0 = vpop.permute.xlu1 %4480 }
  0xc0   : > { %3897 = vmatmul.mubr.msk.f32.gmra.mrb[10].mxu0 %vm593_vm5, %v3879_v48  ;;  %v2420_v4 = vsel %vm2417_vm9, %v4473_v29, %v4467_v56  ;;  %v2421_v9 = vsel %vm2417_vm9, %v4467_v56, %v4468_v54  ;;  %v4483_v13 = vunpack.i.h.bf16 %v4481_v0  ;;  %v4482_v14 = vunpack.i.l.bf16 %v4481_v0  ;;  %v481_v56 = vld [vmem:[%s6107_s3] sm:$0xff] }
  0xc1   : > { %3748 = vmatmul.mubr.msk.f32.gmra.mrb[20].mxu1 %vm593_vm5, %v3730_v8  ;;  %2247 = vmatprep.mubr.f32.mxu0 %v4704_v1  ;;  %v4065_v20 = vpack.c.bf16 %v2421_v9, %v2419_v60  ;;  %v4476_v21 = vpop.permute.xlu0 %4475  ;;  %v4067_v24 = vpack.c.bf16 %v2420_v4, %v2418_v63  ;;  %v3885_v8 = vld [vmem:[%s6107_s3 + $0x2d8] sm:$0xff] }
  0xc2   : > { %777 = vmatprep.mubr.f32.mxu1 %v4704_v1  ;;  %v4478_v30 = vunpack.i.h.bf16 %v4476_v21  ;;  %v4477_v31 = vunpack.i.l.bf16 %v4476_v21  ;;  %v2425_v33 = vsel %vm2417_vm9, %v4482_v14, %v4483_v13 }
  0xc3   : > { %4066 = vmatprep.subr.bf16.mxu0 %v4065_v20  ;;  %v2414_v34 = vpop.permute.xlu1 %2413  ;;  %v3886_v20 = vld [vmem:[%s6107_s3 + $0x2e0] sm:$0xff] }
  0xc4   : > { %3898 = vmatmul.mubr.msk.f32.gmra.mrb[12].mxu0 %vm593_vm5, %v3880_v17  ;;  %v2423_v43 = vsel %vm2417_vm9, %v4477_v31, %v4478_v30 }
  0xc5   : > { %3749 = vmatmul.mubr.msk.f32.gmra.mrb[22].mxu1 %vm593_vm5, %v3731_v22  ;;  %2253 = vmatprep.mubr.f32.mxu0 %v4704_v1  ;;  %v4486_v44 = vpop.permute.xlu0 %4485  ;;  %v4069_v57 = vpack.c.bf16 %v2425_v33, %v2423_v43 }
  0xc6   : > { %783 = vmatprep.mubr.f32.mxu1 %v4704_v1  ;;  %4068 = vmatpush1.bf16.msra.mxu0 %v4067_v24  ;;  %v4488_v42 = vunpack.i.h.bf16 %v4486_v44  ;;  %v4487_v32 = vunpack.i.l.bf16 %v4486_v44  ;;  %v482_v24 = vld [vmem:[%s6107_s3 + $0x8] sm:$0xff] }
  0xc7   : > { %4070 = vmatprep.subr.bf16.mxu0 %v4069_v57  ;;  %v2412_v36 = vpop.permute.xlu1 %2411 }
  0xc8   : > { %3899 = vmatmul.mubr.msk.f32.gmra.mrb[14].mxu0 %vm593_vm5, %v3881_v35  ;;  %v2422_v47 = vsel %vm2417_vm9, %v4487_v32, %v4477_v31  ;;  %v2424_v46 = vsel %vm2417_vm9, %v4488_v42, %v4482_v14  ;;  %v2426_v40 = vsel %vm2417_vm9, %v2412_v36, %v2414_v34  ;;  %v483_v35 = vld [vmem:[%s6107_s3 + $0x10] sm:$0xff] }
  0xc9   : > { %3750 = vmatmul.mubr.msk.f32.gmra.mrb[24].mxu1 %vm593_vm5, %v3732_v45  ;;  %2259 = vmatprep.mubr.f32.mxu0 %v4704_v1  ;;  %v4071_v51 = vpack.c.bf16 %v2424_v46, %v2422_v47  ;;  %v2416_v37 = vpop.permute.xlu0 %2415  ;;  %v3888_v32 = vld [vmem:[%s6107_s3 + $0x2f0] sm:$0xff]  ;;  %v484_v47 = vld [vmem:[%s6107_s3 + $0x18] sm:$0xff] }
  0xca   : > { %789 = vmatprep.mubr.f32.mxu1 %v4704_v1  ;;  %v2427_v59 = vsel %vm2417_vm9, %v2414_v34, %v2416_v37  ;;  %v5254_v1 = vld [vmem:[#allocation2] sm:$0xff]  ;;  %v3887_v34 = vld [vmem:[%s6107_s3 + $0x2e8] sm:$0xff] }
  0xcb   : > { %4072 = vmatpush1.bf16.msra.mxu0 %v4071_v51  ;;  %v4496_v39 = vpop.permute.xlu1 %4495 }
  0xcc   : > { %3900 = vmatmul.mubr.msk.f32.gmra.mrb[16].mxu0 %vm593_vm5, %v3882_v58  ;;  %3924 = vmatprep.subr.msk.mxu0 %vm642_vm4, %v2427_v59  ;;  %v4498_v61 = vunpack.i.h.bf16 %v4496_v39  ;;  %v4497_v19 = vunpack.i.l.bf16 %v4496_v39 }
  0xcd   : > { %3751 = vmatmul.mubr.msk.f32.gmra.mrb[26].mxu1 %vm593_vm5, %v3733_v38  ;;  %2265 = vmatprep.mubr.f32.mxu0 %v5254_v1  ;;  %v4491_v18 = vpop.permute.xlu0 %4490 }
  0xce   : > { %795 = vmatprep.mubr.f32.mxu1 %v5254_v1  ;;  %v4493_v62 = vunpack.i.h.bf16 %v4491_v18  ;;  %v4492_v26 = vunpack.i.l.bf16 %v4491_v18  ;;  %v1166_v6 = vsel %vm1162_vm10, %v4497_v19, %v4498_v61 }
  0xcf   : > { %3925 = vmatpush1.msk.msra.mxu0 %vm642_vm4, %v2426_v40  ;;  %v4506_v27 = vpop.permute.xlu1 %4505 }
  0xd0   : > { %3901 = vmatmul.mubr.msk.f32.gmra.mrb[18].mxu0 %vm593_vm5, %v3883_v23  ;;  %v1164_v12 = vsel %vm1162_vm10, %v4492_v26, %v4493_v62  ;;  %v4508_v16 = vunpack.i.h.bf16 %v4506_v27  ;;  %v4507_v3 = vunpack.i.l.bf16 %v4506_v27 }
  0xd1   : > { %3752 = vmatmul.mubr.msk.f32.gmra.mrb[28].mxu1 %vm593_vm5, %v3734_v25  ;;  %2271 = vmatprep.mubr.f32.mxu0 %v5254_v1  ;;  %v4501_v10 = vpop.permute.xlu0 %4500  ;;  %v4033_v2 = vpack.c.bf16 %v1166_v6, %v1164_v12  ;;  %v485_v25 = vld [vmem:[%s6107_s3 + $0x20] sm:$0xff] }
  0xd2   : > { %801 = vmatprep.mubr.f32.mxu1 %v5254_v1  ;;  %v4503_v11 = vunpack.i.h.bf16 %v4501_v10  ;;  %v4502_v15 = vunpack.i.l.bf16 %v4501_v10  ;;  %v1168_v4 = vsel %vm1162_vm10, %v4507_v3, %v4508_v16 }
  0xd3   : > { %4034 = vmatprep.subr.bf16.mxu1 %v4033_v2  ;;  %v4516_v28 = vpop.permute.xlu1 %4515  ;;  %v3908_v2 = vld [vmem:[%s6107_s3 + $0x300] sm:$0xff] }
  0xd4   : > { %3902 = vmatmul.mubr.msk.f32.gmra.mrb[20].mxu0 %vm593_vm5, %v3884_v5  ;;  %v1163_v29 = vsel %vm1162_vm10, %v4502_v15, %v4492_v26  ;;  %v1165_v41 = vsel %vm1162_vm10, %v4503_v11, %v4497_v19  ;;  %v4518_v48 = vunpack.i.h.bf16 %v4516_v28  ;;  %v4517_v49 = vunpack.i.l.bf16 %v4516_v28  ;;  %v3889_v19 = vld [vmem:[%s6107_s3 + $0x2f8] sm:$0xff]  ;;  %v486_v11 = vld [vmem:[%s6107_s3 + $0x28] sm:$0xff] }
  0xd5   : > { %3753 = vmatmul.mubr.msk.f32.gmra.mrb[30].mxu1 %vm593_vm5, %v3735_v7  ;;  %2277 = vmatprep.mubr.f32.mxu0 %v5254_v1  ;;  %v4511_v54 = vpop.permute.xlu0 %4510  ;;  %v4035_v60 = vpack.c.bf16 %v1165_v41, %v1163_v29 }
  0xd6   : > { %988 = vmatprep.mubr.f32.mxu1 %v5254_v1  ;;  %v4513_v63 = vunpack.i.h.bf16 %v4511_v54  ;;  %v4512_v0 = vunpack.i.l.bf16 %v4511_v54  ;;  %v1167_v9 = vsel %vm1162_vm10, %v4517_v49, %v4507_v3  ;;  %v3909_v49 = vld [vmem:[%s6107_s3 + $0x308] sm:$0xff]  ;;  %v487_v54 = vld [vmem:[%s6107_s3 + $0x30] sm:$0xff] }
  0xd7   : > { %v1161_v13 = vpop.permute.xlu1 %1160 }
  0xd8   : > { %3903 = vmatmul.mubr.msk.f32.gmra.mrb[22].mxu0 %vm593_vm5, %v3885_v8  ;;  %v1169_v14 = vsel %vm1162_vm10, %v4518_v48, %v4512_v0  ;;  %v1170_v17 = vsel %vm1162_vm10, %v4512_v0, %v4513_v63 }
  0xd9   : > { %3756 = vmatmul.mubr.msk.f32.vlgmr.msra.gmra.mrb[0].mxu1 %vm593_vm5, %v481_v56  ;;  %2283 = vmatprep.mubr.f32.mxu0 %v5254_v1  ;;  %v1159_v21 = vpop.permute.xlu0 %1158  ;;  %v4037_v22 = vpack.c.bf16 %v1170_v17, %v1168_v4  ;;  %v4039_v30 = vpack.c.bf16 %v1169_v14, %v1167_v9  ;;  %v3910_v9 = vld [vmem:[%s6107_s3 + $0x310] sm:$0xff]  ;;  %v488_v14 = vld [vmem:[%s6107_s3 + $0x38] sm:$0xff] }
  0xda   : > { %994 = vmatprep.mubr.f32.mxu1 %v5254_v1  ;;  %4036 = vmatpush1.bf16.msra.mxu1 %v4035_v60  ;;  %v1172_v33 = vsel %vm1162_vm10, %v1159_v21, %v1161_v13 }
  0xdb   : > { %4038 = vmatprep.subr.bf16.mxu1 %v4037_v22  ;;  %v4521_v31 = vpop.permute.xlu1 %4520 }
  0xdc   : > { %3904 = vmatmul.mubr.msk.f32.gmra.mrb[24].mxu0 %vm593_vm5, %v3886_v20  ;;  %v4523_v44 = vunpack.i.h.bf16 %v4521_v31  ;;  %v4522_v57 = vunpack.i.l.bf16 %v4521_v31  ;;  %v3911_v31 = vld [vmem:[%s6107_s3 + $0x318] sm:$0xff] }
  0xdd   : > { %3757 = vmatmul.mubr.msk.f32.gmra.mrb[2].mxu1 %vm593_vm5, %v482_v24  ;;  %2289 = vmatprep.mubr.f32.mxu0 %v5254_v1  ;;  %v1157_v43 = vpop.permute.xlu0 %1156 }
  0xde   : > { %1000 = vmatprep.mubr.f32.mxu1 %v5254_v1  ;;  %4040 = vmatpush1.bf16.msra.mxu1 %v4039_v30  ;;  %v1171_v45 = vsel %vm1162_vm10, %v1157_v43, %v1159_v21  ;;  %v2760_v51 = vsel %vm2758_vm11, %v4522_v57, %v4523_v44  ;;  %v489_v43 = vld [vmem:[%s6107_s3 + $0x40] sm:$0xff] }
  0xdf   : > { %3788 = vmatprep.subr.msk.mxu1 %vm642_vm4, %v1172_v33  ;;  %v4531_v42 = vpop.permute.xlu1 %4530 }
  0xe0   : > { %3905 = vmatmul.mubr.msk.f32.gmra.mrb[26].mxu0 %vm593_vm5, %v3887_v34  ;;  %v4533_v37 = vunpack.i.h.bf16 %v4531_v42  ;;  %v4532_v38 = vunpack.i.l.bf16 %v4531_v42  ;;  %v3913_v42 = vld [vmem:[%s6107_s3 + $0x328] sm:$0xff] }
  0xe1   : > { %3758 = vmatmul.mubr.msk.f32.gmra.mrb[4].mxu1 %vm593_vm5, %v483_v35  ;;  %2295 = vmatprep.mubr.f32.mxu0 %v5254_v1  ;;  %v4526_v36 = vpop.permute.xlu0 %4525  ;;  %v3912_v35 = vld [vmem:[%s6107_s3 + $0x320] sm:$0xff] }
  0xe2   : > { %1006 = vmatprep.mubr.f32.mxu1 %v5254_v1  ;;  %3789 = vmatpush1.msk.msra.mxu1 %vm642_vm4, %v1171_v45  ;;  %v4528_v46 = vunpack.i.h.bf16 %v4526_v36  ;;  %v4527_v58 = vunpack.i.l.bf16 %v4526_v36  ;;  %v2759_v27 = vsel %vm2758_vm11, %v4532_v38, %v4522_v57  ;;  %v490_v45 = vld [vmem:[%s6107_s3 + $0x48] sm:$0xff] }
  0xe3   : > { %v4541_v59 = vpop.permute.xlu1 %4540 }
  0xe4   : > { %3906 = vmatmul.mubr.msk.f32.gmra.mrb[28].mxu0 %vm593_vm5, %v3888_v32  ;;  %v2762_v39 = vsel %vm2758_vm11, %v4527_v58, %v4528_v46  ;;  %v4543_v40 = vunpack.i.h.bf16 %v4541_v59  ;;  %v4542_v61 = vunpack.i.l.bf16 %v4541_v59  ;;  %v2761_v6 = vsel %vm2758_vm11, %v4533_v37, %v4527_v58  ;;  %v3914_v46 = vld [vmem:[%s6107_s3 + $0x330] sm:$0xff]  ;;  %v492_v37 = vld [vmem:[%s6107_s3 + $0x58] sm:$0xff] }
  0xe5   : > { %3759 = vmatmul.mubr.msk.f32.gmra.mrb[6].mxu1 %vm593_vm5, %v484_v47  ;;  %2301 = vmatprep.mubr.f32.mxu0 %v5254_v1  ;;  %v4073_v23 = vpack.c.bf16 %v2762_v39, %v2760_v51  ;;  %v4536_v18 = vpop.permute.xlu0 %4535  ;;  %v4075_v15 = vpack.c.bf16 %v2761_v6, %v2759_v27  ;;  %v491_v47 = vld [vmem:[%s6107_s3 + $0x50] sm:$0xff]  ;;  %v3915_v39 = vld [vmem:[%s6107_s3 + $0x338] sm:$0xff]  ;;  %v494_v6 = vld [vmem:[%s6107_s3 + $0x68] sm:$0xff] }
  0xe6   : > { %1012 = vmatprep.mubr.f32.mxu1 %v5254_v1  ;;  %v4538_v62 = vunpack.i.h.bf16 %v4536_v18  ;;  %v4537_v26 = vunpack.i.l.bf16 %v4536_v18  ;;  %v2766_v10 = vsel %vm2758_vm11, %v4542_v61, %v4543_v40  ;;  %v3917_v27 = vld [vmem:[%s6107_s3 + $0x348] sm:$0xff] }
  0xe7   : > { %4074 = vmatprep.subr.bf16.mxu0 %v4073_v23  ;;  %v2755_v12 = vpop.permute.xlu1 %2754 }
  0xe8   : > { %3907 = vmatmul.mubr.msk.f32.gmra.mrb[30].mxu0 %vm593_vm5, %v3889_v19  ;;  %v2764_v5 = vsel %vm2758_vm11, %v4537_v26, %v4538_v62  ;;  %v3916_v62 = vld [vmem:[%s6107_s3 + $0x340] sm:$0xff] }
  0xe9   : > { %3760 = vmatmul.mubr.msk.f32.gmra.mrb[8].mxu1 %vm593_vm5, %v485_v25  ;;  %2552 = vmatprep.mubr.f32.mxu0 %v5254_v1  ;;  %v4546_v7 = vpop.permute.xlu0 %4545  ;;  %v4077_v28 = vpack.c.bf16 %v2766_v10, %v2764_v5 }
  0xea   : > { %1018 = vmatprep.mubr.f32.mxu1 %v5254_v1  ;;  %v4548_v16 = vunpack.i.h.bf16 %v4546_v7  ;;  %v4547_v3 = vunpack.i.l.bf16 %v4546_v7 }
  0xeb   : > { %v2753_v29 = vpop.permute.xlu1 %2752 }
  0xec   : > { %3926 = vmatmul.mubr.msk.f32.vlgmr.msra.gmra.mrb[0].mxu0 %vm593_vm5, %v3908_v2  ;;  %v2763_v41 = vsel %vm2758_vm11, %v4547_v3, %v4537_v26  ;;  %v2765_v48 = vsel %vm2758_vm11, %v4548_v16, %v4542_v61  ;;  %v2767_v22 = vsel %vm2758_vm11, %v2753_v29, %v2755_v12  ;;  %v493_v61 = vld [vmem:[%s6107_s3 + $0x60] sm:$0xff]  ;;  %v3918_v16 = vld [vmem:[%s6107_s3 + $0x350] sm:$0xff]  ;;  %v496_v3 = vld [vmem:[%s6107_s3 + $0x78] sm:$0xff] }
  0xed   : > { %3761 = vmatmul.mubr.msk.f32.gmra.mrb[10].mxu1 %vm593_vm5, %v486_v11  ;;  %2558 = vmatprep.mubr.f32.mxu0 %v5254_v1  ;;  %v2757_v8 = vpop.permute.xlu0 %2756  ;;  %v4079_v56 = vpack.c.bf16 %v2765_v48, %v2763_v41 }
  0xee   : > { %1024 = vmatprep.mubr.f32.mxu1 %v5254_v1  ;;  %4076 = vmatpush1.bf16.msra.mxu0 %v4075_v15  ;;  %v2768_v63 = vsel %vm2758_vm11, %v2755_v12, %v2757_v8  ;;  %v495_v12 = vld [vmem:[%s6107_s3 + $0x70] sm:$0xff] }
  0xef   : > { %4078 = vmatprep.subr.bf16.mxu0 %v4077_v28  ;;  %v5365_v60 = vpop.permute.xlu1 %4555 }
  0xf0   : > { %3927 = vmatmul.mubr.msk.f32.gmra.mrb[2].mxu0 %vm593_vm5, %v3909_v49  ;;  %v4558_v0 = vunpack.i.h.bf16 %v5365_v60  ;;  %v4557_v4 = vunpack.i.l.bf16 %v5365_v60 }
  0xf1   : > { %3762 = vmatmul.mubr.msk.f32.gmra.mrb[12].mxu1 %vm593_vm5, %v487_v54  ;;  %2564 = vmatprep.mubr.f32.mxu0 %v5254_v1  ;;  %v5376_v13 = vpop.permute.xlu0 %4550  ;;  %v3919_v54 = vld [vmem:[%s6107_s3 + $0x358] sm:$0xff] }
  0xf2   : > { %1030 = vmatprep.mubr.f32.mxu1 %v5254_v1  ;;  %4080 = vmatpush1.bf16.msra.mxu0 %v4079_v56  ;;  %v4553_v17 = vunpack.i.h.bf16 %v5376_v13  ;;  %v4552_v20 = vunpack.i.l.bf16 %v5376_v13  ;;  %v1477_v21 = vsel %vm1473_vm12, %v4557_v4, %v4558_v0  ;;  %v3772_v56 = vld [vmem:[%s6107_s3 + $0x100] sm:$0xff]  ;;  %v3773_v13 = vld [vmem:[%s6107_s3 + $0x108] sm:$0xff] }
  0xf3   : > { %3958 = vmatprep.subr.msk.mxu0 %vm642_vm4, %v2768_v63  ;;  %v5389_v24 = vpop.permute.xlu1 %4565 }
  0xf4   : > { %3928 = vmatmul.mubr.msk.f32.gmra.mrb[4].mxu0 %vm593_vm5, %v3910_v9  ;;  %v1475_v30 = vsel %vm1473_vm12, %v4552_v20, %v4553_v17  ;;  %v4568_v2 = vunpack.i.h.bf16 %v5389_v24  ;;  %v4567_v7 = vunpack.i.l.bf16 %v5389_v24  ;;  %v3920_v9 = vld [vmem:[%s6107_s3 + $0x360] sm:$0xff] }
  0xf5   : > { %3763 = vmatmul.mubr.msk.f32.gmra.mrb[14].mxu1 %vm593_vm5, %v488_v14  ;;  %2570 = vmatprep.mubr.f32.mxu0 %v5254_v1  ;;  %v5400_v33 = vpop.permute.xlu0 %4560  ;;  %v4041_v34 = vpack.c.bf16 %v1477_v21, %v1475_v30  ;;  %v3921_v21 = vld [vmem:[%s6107_s3 + $0x368] sm:$0xff] }
  0xf6   : > { %1036 = vmatprep.mubr.f32.mxu1 %v5254_v1  ;;  %3959 = vmatpush1.msk.msra.mxu0 %vm642_vm4, %v2767_v22  ;;  %v4563_v5 = vunpack.i.h.bf16 %v5400_v33  ;;  %v4562_v10 = vunpack.i.l.bf16 %v5400_v33  ;;  %v1479_v49 = vsel %vm1473_vm12, %v4567_v7, %v4568_v2  ;;  %v3774_v22 = vld [vmem:[%s6107_s3 + $0x110] sm:$0xff] }
  0xf7   : > { %4042 = vmatprep.subr.bf16.mxu1 %v4041_v34  ;;  %v5415_v57 = vpop.permute.xlu1 %4575  ;;  %v3775_v34 = vld [vmem:[%s6107_s3 + $0x118] sm:$0xff] }
  0xf8   : > { %3929 = vmatmul.mubr.msk.f32.gmra.mrb[6].mxu0 %vm593_vm5, %v3911_v31  ;;  %v1474_v28 = vsel %vm1473_vm12, %v4562_v10, %v4552_v20  ;;  %v1476_v29 = vsel %vm1473_vm12, %v4563_v5, %v4557_v4  ;;  %v4578_v41 = vunpack.i.h.bf16 %v5415_v57  ;;  %v4577_v48 = vunpack.i.l.bf16 %v5415_v57  ;;  %v3922_v31 = vld [vmem:[%s6107_s3 + $0x370] sm:$0xff]  ;;  %v3779_v10 = vld [vmem:[%s6107_s3 + $0x138] sm:$0xff] }
  0xf9   : > { %3764 = vmatmul.mubr.msk.f32.gmra.mrb[16].mxu1 %vm593_vm5, %v489_v43  ;;  %2576 = vmatprep.mubr.f32.mxu0 %v5254_v1  ;;  %v5413_v44 = vpop.permute.xlu0 %4570  ;;  %v4043_v60 = vpack.c.bf16 %v1476_v29, %v1474_v28  ;;  %v3944_v5 = vld [vmem:[%s6107_s3 + $0x390] sm:$0xff]  ;;  %v3946_v28 = vld [vmem:[%s6107_s3 + $0x3a0] sm:$0xff]  ;;  %v379_v29 = vld [vmem:[%s6108_s4 + $0x18] sm:$0xff] }
  0xfa   : > { %1042 = vmatprep.mubr.f32.mxu1 %v5254_v1  ;;  %v4573_v11 = vunpack.i.h.bf16 %v5413_v44  ;;  %v4572_v15 = vunpack.i.l.bf16 %v5413_v44  ;;  %v1478_v0 = vsel %vm1473_vm12, %v4577_v48, %v4567_v7  ;;  %v3945_v7 = vld [vmem:[%s6107_s3 + $0x398] sm:$0xff]  ;;  %v378_v48 = vld [vmem:[%s6108_s4 + $0x10] sm:$0xff] }
  0xfb   : > { %v5429_v36 = vpop.permute.xlu1 %1471 }
  0xfc   : > { %3930 = vmatmul.mubr.msk.f32.gmra.mrb[8].mxu0 %vm593_vm5, %v3912_v35  ;;  %v1481_v8 = vsel %vm1473_vm12, %v4572_v15, %v4573_v11  ;;  %v1480_v63 = vsel %vm1473_vm12, %v4578_v41, %v4572_v15  ;;  %v376_v11 = vld [vmem:[%s6108_s4] sm:$0xff]  ;;  %v3781_v41 = vld [vmem:[%s6107_s3 + $0x148] sm:$0xff] }
  0xfd   : > { %3765 = vmatmul.mubr.msk.f32.gmra.mrb[18].mxu1 %vm593_vm5, %v490_v45  ;;  %2582 = vmatprep.mubr.f32.mxu0 %v5254_v1  ;;  %v5427_v32 = vpop.permute.xlu0 %1469  ;;  %v4045_v4 = vpack.c.bf16 %v1481_v8, %v1479_v49  ;;  %v4047_v14 = vpack.c.bf16 %v1480_v63, %v1478_v0  ;;  %v3780_v15 = vld [vmem:[%s6107_s3 + $0x140] sm:$0xff]  ;;  %v3947_v49 = vld [vmem:[%s6107_s3 + $0x3a8] sm:$0xff]  ;;  %v383_v63 = vld [vmem:[%s6108_s4 + $0x38] sm:$0xff] }
  0xfe   : > { %1048 = vmatprep.mubr.f32.mxu1 %v5254_v1  ;;  %v1483_v20 = vsel %vm1473_vm12, %v5427_v32, %v5429_v36  ;;  %v3923_v36 = vld [vmem:[%s6107_s3 + $0x378] sm:$0xff]  ;;  %v381_v8 = vld [vmem:[%s6108_s4 + $0x28] sm:$0xff] }
  0xff   : > { %v5443_v51 = vpop.permute.xlu1 %4580  ;;  %v3783_v0 = vld [vmem:[%s6107_s3 + $0x158] sm:$0xff] }
 0x100   : > { %3931 = vmatmul.mubr.msk.f32.gmra.mrb[10].mxu0 %vm593_vm5, %v3913_v42  ;;  %v4583_v38 = vunpack.i.h.bf16 %v5443_v51  ;;  %v4582_v59 = vunpack.i.l.bf16 %v5443_v51  ;;  %v3777_v51 = vld [vmem:[%s6107_s3 + $0x128] sm:$0xff] }
 0x101   : > { %3766 = vmatmul.mubr.msk.f32.gmra.mrb[20].mxu1 %vm593_vm5, %v491_v47  ;;  %2588 = vmatprep.mubr.f32.mxu0 %v5254_v1  ;;  %v5441_v58 = vpop.permute.xlu0 %1467 }
 0x102   : > { %1054 = vmatprep.mubr.f32.mxu1 %v5254_v1  ;;  %v3071_v18 = vsel %vm3069_vm13, %v4582_v59, %v4583_v38  ;;  %v1482_v30 = vsel %vm1473_vm12, %v5441_v58, %v5427_v32 }
 0x103   : > { %v4591_v17 = vpop.permute.xlu1 %4590 }
 0x104   : > { %3932 = vmatmul.mubr.msk.f32.gmra.mrb[12].mxu0 %vm593_vm5, %v3914_v46  ;;  %v4593_v43 = vunpack.i.h.bf16 %v4591_v17  ;;  %v4592_v35 = vunpack.i.l.bf16 %v4591_v17  ;;  %v388_v17 = vld [vmem:[%s6108_s4 + $0x60] sm:$0xff] }
 0x105   : > { %3767 = vmatmul.mubr.msk.f32.gmra.mrb[22].mxu1 %vm593_vm5, %v492_v37  ;;  %2594 = vmatprep.mubr.f32.mxu0 %v5254_v1  ;;  %v5457_v40 = vpop.permute.xlu0 %4585 }
 0x106   : > { %1060 = vmatprep.mubr.f32.mxu1 %v5254_v1  ;;  %v4588_v19 = vunpack.i.h.bf16 %v5457_v40  ;;  %v4587_v23 = vunpack.i.l.bf16 %v5457_v40  ;;  %v3070_v46 = vsel %vm3069_vm13, %v4592_v35, %v4582_v59  ;;  %v3942_v40 = vld [vmem:[%s6107_s3 + $0x380] sm:$0xff]  ;;  %v387_v35 = vld [vmem:[%s6108_s4 + $0x58] sm:$0xff] }
 0x107   : > { %v4601_v33 = vpop.permute.xlu1 %4600 }
 0x108   : > { %3933 = vmatmul.mubr.msk.f32.gmra.mrb[14].mxu0 %vm593_vm5, %v3915_v39  ;;  %v3073_v25 = vsel %vm3069_vm13, %v4587_v23, %v4588_v19  ;;  %v4603_v45 = vunpack.i.h.bf16 %v4601_v33  ;;  %v4602_v42 = vunpack.i.l.bf16 %v4601_v33  ;;  %v3072_v47 = vsel %vm3069_vm13, %v4593_v43, %v4587_v23  ;;  %v3786_v33 = vld [vmem:[%s6107_s3 + $0x170] sm:$0xff] }
 0x109   : > { %3768 = vmatmul.mubr.msk.f32.gmra.mrb[24].mxu1 %vm593_vm5, %v493_v61  ;;  %2600 = vmatprep.mubr.f32.mxu0 %v5254_v1  ;;  %v4081_v26 = vpack.c.bf16 %v3073_v25, %v3071_v18  ;;  %v4596_v24 = vpop.permute.xlu0 %4595  ;;  %v4083_v59 = vpack.c.bf16 %v3072_v47, %v3070_v46  ;;  %v3943_v25 = vld [vmem:[%s6107_s3 + $0x388] sm:$0xff]  ;;  %v3952_v43 = vld [vmem:[%s6107_s3 + $0x3d0] sm:$0xff]  ;;  %v3809_v46 = vld [vmem:[%s6107_s3 + $0x198] sm:$0xff] }
 0x10a   : > { %1066 = vmatprep.mubr.f32.mxu1 %v5254_v1  ;;  %v4598_v44 = vunpack.i.h.bf16 %v4596_v24  ;;  %v4597_v57 = vunpack.i.l.bf16 %v4596_v24  ;;  %v3077_v39 = vsel %vm3069_vm13, %v4602_v42, %v4603_v45  ;;  %v390_v24 = vld [vmem:[%s6108_s4 + $0x70] sm:$0xff]  ;;  %v3953_v45 = vld [vmem:[%s6107_s3 + $0x3d8] sm:$0xff] }
 0x10b   : > { %4082 = vmatprep.subr.bf16.mxu0 %v4081_v26  ;;  %v3066_v61 = vpop.permute.xlu1 %3065  ;;  %v3778_v26 = vld [vmem:[%s6107_s3 + $0x130] sm:$0xff] }
 0x10c   : > { %3934 = vmatmul.mubr.msk.f32.gmra.mrb[16].mxu0 %vm593_vm5, %v3916_v62  ;;  %v3075_v38 = vsel %vm3069_vm13, %v4597_v57, %v4598_v44  ;;  %v3787_v44 = vld [vmem:[%s6107_s3 + $0x178] sm:$0xff]  ;;  %v3808_v47 = vld [vmem:[%s6107_s3 + $0x190] sm:$0xff] }
 0x10d   : > { %3769 = vmatmul.mubr.msk.f32.gmra.mrb[26].mxu1 %vm593_vm5, %v494_v6  ;;  %2606 = vmatprep.mubr.f32.mxu0 %v5254_v1  ;;  %v4606_v32 = vpop.permute.xlu0 %4605  ;;  %v4085_v18 = vpack.c.bf16 %v3077_v39, %v3075_v38  ;;  %v3976_v38 = vld [vmem:[%s6107_s3 + $0x400] sm:$0xff]  ;;  %v3811_v39 = vld [vmem:[%s6107_s3 + $0x1a8] sm:$0xff] }
 0x10e   : > { %1072 = vmatprep.mubr.f32.mxu1 %v5254_v1  ;;  %v4608_v58 = vunpack.i.h.bf16 %v4606_v32  ;;  %v4607_v37 = vunpack.i.l.bf16 %v4606_v32  ;;  %v3954_v32 = vld [vmem:[%s6107_s3 + $0x3e0] sm:$0xff] }
 0x110   : > { %3935 = vmatmul.mubr.msk.f32.gmra.mrb[18].mxu0 %vm593_vm5, %v3917_v27  ;;  %v3074_v19 = vsel %vm3069_vm13, %v4607_v37, %v4597_v57  ;;  %v3076_v23 = vsel %vm3069_vm13, %v4608_v58, %v4602_v42  ;;  %v386_v57 = vld [vmem:[%s6108_s4 + $0x50] sm:$0xff]  ;;  %v3806_v42 = vld [vmem:[%s6107_s3 + $0x180] sm:$0xff]  ;;  %v3957_v58 = vld [vmem:[%s6107_s3 + $0x3f8] sm:$0xff] }
 0x111   : > { %3770 = vmatmul.mubr.msk.f32.gmra.mrb[28].mxu1 %vm593_vm5, %v495_v12  ;;  %2612 = vmatprep.mubr.f32.mxu0 %v5254_v1  ;;  %v3068_v62 = vpop.permute.xlu0 %3067  ;;  %v4087_v6 = vpack.c.bf16 %v3076_v23, %v3074_v19  ;;  %v3064_v12 = vpop.permute.xlu1 %3063  ;;  %v3810_v37 = vld [vmem:[%s6107_s3 + $0x1a0] sm:$0xff]  ;;  %v3979_v19 = vld [vmem:[%s6107_s3 + $0x418] sm:$0xff] }
 0x112   : > { %1078 = vmatprep.mubr.f32.mxu1 %v5254_v1  ;;  %v3079_v27 = vsel %vm3069_vm13, %v3066_v61, %v3068_v62  ;;  %v3078_v2 = vsel %vm3069_vm13, %v3064_v12, %v3066_v61  ;;  %v3813_v61 = vld [vmem:[%s6107_s3 + $0x1b8] sm:$0xff]  ;;  %v3814_v23 = vld [vmem:[%s6107_s3 + $0x1c0] sm:$0xff]  ;;  %v3981_v62 = vld [vmem:[%s6107_s3 + $0x428] sm:$0xff] }
 0x113   : > { %v3983_v12 = vld [vmem:[%s6107_s3 + $0x438] sm:$0xff] }
 0x114   : > { %3936 = vmatmul.mubr.msk.f32.gmra.mrb[20].mxu0 %vm593_vm5, %v3918_v16  ;;  %v4713_v16 = vmov 0  }
 0x115   : > { %3771 = vmatmul.mubr.msk.f32.gmra.mrb[30].mxu1 %vm593_vm5, %v496_v3  ;;  %2618 = vmatprep.mubr.f32.mxu0 %v5254_v1  ;;  %v377_v3 = vld [vmem:[%s6108_s4 + $0x8] sm:$0xff] }
 0x116   : > { %1297 = vmatprep.mubr.f32.mxu1 %v5254_v1  ;;  %4609 = vset.pattern.permute.xlu0 %v4713_v16 }
 0x117   : > { %4610 = vset.pattern.permute.xlu1 %v4713_v16  ;;  %3335 = vperm.xlu0 %4609, %v376_v11   ;;  %v3820_v11 = vld [vmem:[%s6107_s3 + $0x1f0] sm:$0xff]  ;;  %v3821_v16 = vld [vmem:[%s6107_s3 + $0x1f8] sm:$0xff] }
 0x118   : > { %3937 = vmatmul.mubr.msk.f32.gmra.mrb[22].mxu0 %vm593_vm5, %v3919_v54  ;;  %3340 = vperm.xlu1 %4610, %v377_v3   ;;  %v3782_v54 = vld [vmem:[%s6107_s3 + $0x150] sm:$0xff]  ;;  %v3987_v3 = vld [vmem:[%s6107_s3 + $0x458] sm:$0xff] }
 0x119   : > { %3790 = vmatmul.mubr.msk.f32.vlgmr.msra.gmra.mrb[0].mxu1 %vm593_vm5, %v3772_v56  ;;  %2624 = vmatprep.mubr.f32.mxu0 %v5254_v1  ;;  %v380_v56 = vld [vmem:[%s6108_s4 + $0x20] sm:$0xff] }
 0x11a   : > { %1303 = vmatprep.mubr.f32.mxu1 %v5254_v1  ;;  %4044 = vmatpush1.bf16.msra.mxu1 %v4043_v60  ;;  %v3948_v60 = vld [vmem:[%s6107_s3 + $0x3b0] sm:$0xff] }
 0x11b   : > { %4046 = vmatprep.subr.bf16.mxu1 %v4045_v4  ;;  %3350 = vperm.xlu0 %4609, %v379_v29   ;;  %v382_v4 = vld [vmem:[%s6108_s4 + $0x30] sm:$0xff]  ;;  %v4695_v29 = vld [vmem:[#allocation2] sm:$0xff] }
 0x11c   : > { %3938 = vmatmul.mubr.msk.f32.gmra.mrb[24].mxu0 %vm593_vm5, %v3920_v9  ;;  %3345 = vperm.xlu1 %4610, %v378_v48   ;;  %v3949_v9 = vld [vmem:[%s6107_s3 + $0x3b8] sm:$0xff]  ;;  %v3849_v48 = vld [vmem:[%s6107_s3 + $0x248] sm:$0xff] }
 0x11d   : > { %3791 = vmatmul.mubr.msk.f32.gmra.mrb[2].mxu1 %vm593_vm5, %v3773_v13  ;;  %2630 = vmatprep.mubr.f32.mxu0 %v5254_v1  ;;  %v389_v13 = vld [vmem:[%s6108_s4 + $0x68] sm:$0xff] }
 0x11e   : > { %1309 = vmatprep.mubr.f32.mxu1 %v5254_v1  ;;  %4048 = vmatpush1.bf16.msra.mxu1 %v4047_v14  ;;  %v3784_v14 = vld [vmem:[%s6107_s3 + $0x160] sm:$0xff] }
 0x11f   : > { %3822 = vmatprep.subr.msk.mxu1 %vm642_vm4, %v1483_v20  ;;  %3360 = vperm.xlu0 %4609, %v381_v8   ;;  %v3950_v20 = vld [vmem:[%s6107_s3 + $0x3c0] sm:$0xff]  ;;  %v3990_v8 = vld [vmem:[%s6107_s3 + $0x470] sm:$0xff] }
 0x120   : > { %3939 = vmatmul.mubr.msk.f32.gmra.mrb[26].mxu0 %vm593_vm5, %v3921_v21  ;;  %3355 = vperm.xlu1 %4610, %v380_v56   ;;  %v391_v21 = vld [vmem:[%s6108_s4 + $0x78] sm:$0xff] }
 0x121   : > { %3792 = vmatmul.mubr.msk.f32.gmra.mrb[4].mxu1 %vm593_vm5, %v3774_v22  ;;  %2636 = vmatprep.mubr.f32.mxu0 %v5254_v1  ;;  %v3785_v22 = vld [vmem:[%s6107_s3 + $0x168] sm:$0xff]  ;;  %v3991_v56 = vld [vmem:[%s6107_s3 + $0x478] sm:$0xff] }
 0x122   : > { %1315 = vmatprep.mubr.f32.mxu1 %v5254_v1  ;;  %3823 = vmatpush1.msk.msra.mxu1 %vm642_vm4, %v1482_v30  ;;  %v3951_v30 = vld [vmem:[%s6107_s3 + $0x3c8] sm:$0xff] }
 0x123   : > { %4089 = vmatprep.subr.bf16.mxu1 %v4870_v50  ;;  %v3776_v50 = vld [vmem:[%s6107_s3 + $0x120] sm:$0xff]  ;;  %3370 = vperm.xlu0 %4609, %v383_v63   ;;  %v3853_v63 = vld [vmem:[%s6107_s3 + $0x268] sm:$0xff] }
 0x124   : > { %3940 = vmatmul.mubr.msk.f32.gmra.mrb[28].mxu0 %vm593_vm5, %v3922_v31  ;;  %3365 = vperm.xlu1 %4610, %v382_v4   ;;  %v385_v31 = vld [vmem:[%s6108_s4 + $0x48] sm:$0xff]  ;;  %v3855_v4 = vld [vmem:[%s6107_s3 + $0x278] sm:$0xff] }
 0x125   : > { %3793 = vmatmul.mubr.msk.f32.gmra.mrb[6].mxu1 %vm593_vm5, %v3775_v34  ;;  %2642 = vmatprep.mubr.f32.mxu0 %v5254_v1  ;;  %v384_v34 = vld [vmem:[%s6108_s4 + $0x40] sm:$0xff] }
 0x126   : > { %1321 = vmatprep.mubr.f32.mxu1 %v5254_v1 }
 0x127   : > { %3400 = vperm.xlu0 %4609, %v389_v13  }
 0x128   : > { %3941 = vmatmul.mubr.msk.f32.gmra.mrb[30].mxu0 %vm593_vm5, %v3923_v36  ;;  %3395 = vperm.xlu1 %4610, %v388_v17   ;;  %v3807_v36 = vld [vmem:[%s6107_s3 + $0x188] sm:$0xff] }
 0x129   : > { %3794 = vmatmul.mubr.msk.f32.gmra.mrb[8].mxu1 %vm593_vm5, %v3776_v50  ;;  %2893 = vmatprep.mubr.f32.mxu0 %v5254_v1  ;;  %v3955_v50 = vld [vmem:[%s6107_s3 + $0x3e8] sm:$0xff] }
 0x12a   : > { %1327 = vmatprep.mubr.f32.mxu1 %v5254_v1 }
 0x12b   : > { %3410 = vperm.xlu0 %4609, %v391_v21  }
 0x12c   : > { %3960 = vmatmul.mubr.msk.f32.vlgmr.msra.gmra.mrb[0].mxu0 %vm593_vm5, %v3942_v40  ;;  %3405 = vperm.xlu1 %4610, %v390_v24   ;;  %v3977_v40 = vld [vmem:[%s6107_s3 + $0x408] sm:$0xff] }
 0x12d   : > { %3795 = vmatmul.mubr.msk.f32.gmra.mrb[10].mxu1 %vm593_vm5, %v3777_v51  ;;  %2899 = vmatprep.mubr.f32.mxu0 %v5254_v1  ;;  %v3812_v51 = vld [vmem:[%s6107_s3 + $0x1b0] sm:$0xff] }
 0x12e   : > { %1333 = vmatprep.mubr.f32.mxu1 %v5254_v1  ;;  %4084 = vmatpush1.bf16.msra.mxu0 %v4083_v59  ;;  %v3978_v59 = vld [vmem:[%s6107_s3 + $0x410] sm:$0xff] }
 0x12f   : > { %4086 = vmatprep.subr.bf16.mxu0 %v4085_v18  ;;  %3380 = vperm.xlu0 %4609, %v385_v31   ;;  %v3980_v18 = vld [vmem:[%s6107_s3 + $0x420] sm:$0xff] }
 0x130   : > { %3961 = vmatmul.mubr.msk.f32.gmra.mrb[2].mxu0 %vm593_vm5, %v3943_v25  ;;  %3375 = vperm.xlu1 %4610, %v384_v34   ;;  %v3815_v25 = vld [vmem:[%s6107_s3 + $0x1c8] sm:$0xff] }
 0x131   : > { %3796 = vmatmul.mubr.msk.f32.gmra.mrb[12].mxu1 %vm593_vm5, %v3778_v26  ;;  %2905 = vmatprep.mubr.f32.mxu0 %v5254_v1  ;;  %v3816_v26 = vld [vmem:[%s6107_s3 + $0x1d0] sm:$0xff] }
 0x132   : > { %1339 = vmatprep.mubr.f32.mxu1 %v5254_v1  ;;  %4088 = vmatpush1.bf16.msra.mxu0 %v4087_v6  ;;  %v3982_v6 = vld [vmem:[%s6107_s3 + $0x430] sm:$0xff] }
 0x133   : > { %3992 = vmatprep.subr.msk.mxu0 %vm642_vm4, %v3079_v27  ;;  %3390 = vperm.xlu0 %4609, %v387_v35   ;;  %v3817_v27 = vld [vmem:[%s6107_s3 + $0x1d8] sm:$0xff] }
 0x134   : > { %3962 = vmatmul.mubr.msk.f32.gmra.mrb[4].mxu0 %vm593_vm5, %v3944_v5  ;;  %3385 = vperm.xlu1 %4610, %v386_v57   ;;  %v3818_v5 = vld [vmem:[%s6107_s3 + $0x1e0] sm:$0xff] }
 0x135   : > { %3797 = vmatmul.mubr.msk.f32.gmra.mrb[14].mxu1 %vm593_vm5, %v3779_v10  ;;  %2911 = vmatprep.mubr.f32.mxu0 %v5254_v1  ;;  %v3984_v10 = vld [vmem:[%s6107_s3 + $0x440] sm:$0xff] }
 0x136   : > { %1345 = vmatprep.mubr.f32.mxu1 %v5254_v1  ;;  %3993 = vmatpush1.msk.msra.mxu0 %vm642_vm4, %v3078_v2  ;;  %v3819_v2 = vld [vmem:[%s6107_s3 + $0x1e8] sm:$0xff] }
 0x138   : > { %3963 = vmatmul.mubr.msk.f32.gmra.mrb[6].mxu0 %vm593_vm5, %v3945_v7  ;;  %v3985_v7 = vld [vmem:[%s6107_s3 + $0x448] sm:$0xff] }
 0x139   : > { %3798 = vmatmul.mubr.msk.f32.gmra.mrb[16].mxu1 %vm593_vm5, %v3780_v15  ;;  %2917 = vmatprep.mubr.f32.mxu0 %v5254_v1  ;;  %v3986_v15 = vld [vmem:[%s6107_s3 + $0x450] sm:$0xff] }
 0x13a   : > { %1351 = vmatprep.mubr.f32.mxu1 %v5254_v1 }
 0x13c   : > { %3964 = vmatmul.mubr.msk.f32.gmra.mrb[8].mxu0 %vm593_vm5, %v3946_v28  ;;  %v3848_v28 = vld [vmem:[%s6107_s3 + $0x240] sm:$0xff] }
 0x13d   : > { %3799 = vmatmul.mubr.msk.f32.gmra.mrb[18].mxu1 %vm593_vm5, %v3781_v41  ;;  %2923 = vmatprep.mubr.f32.mxu0 %v5254_v1  ;;  %v3988_v41 = vld [vmem:[%s6107_s3 + $0x460] sm:$0xff] }
 0x13e   : > { %1357 = vmatprep.mubr.f32.mxu1 %v5254_v1 }
 0x140   : > { %3965 = vmatmul.mubr.msk.f32.gmra.mrb[10].mxu0 %vm593_vm5, %v3947_v49  ;;  %v3850_v49 = vld [vmem:[%s6107_s3 + $0x250] sm:$0xff] }
 0x141   : > { %3800 = vmatmul.mubr.msk.f32.gmra.mrb[20].mxu1 %vm593_vm5, %v3782_v54  ;;  %2929 = vmatprep.mubr.f32.mxu0 %v5254_v1  ;;  %v3851_v54 = vld [vmem:[%s6107_s3 + $0x258] sm:$0xff] }
 0x142   : > { %1363 = vmatprep.mubr.f32.mxu1 %v5254_v1 }
 0x144   : > { %3966 = vmatmul.mubr.msk.f32.gmra.mrb[12].mxu0 %vm593_vm5, %v3948_v60  ;;  %v3852_v60 = vld [vmem:[%s6107_s3 + $0x260] sm:$0xff] }
 0x145   : > { %3801 = vmatmul.mubr.msk.f32.gmra.mrb[22].mxu1 %vm593_vm5, %v3783_v0  ;;  %2935 = vmatprep.mubr.f32.mxu0 %v5254_v1  ;;  %v3854_v0 = vld [vmem:[%s6107_s3 + $0x270] sm:$0xff] }
 0x146   : > { %1369 = vmatprep.mubr.f32.mxu1 %v5254_v1 }
 0x148   : > { %3967 = vmatmul.mubr.msk.f32.gmra.mrb[14].mxu0 %vm593_vm5, %v3949_v9 }
 0x149   : > { %3802 = vmatmul.mubr.msk.f32.gmra.mrb[24].mxu1 %vm593_vm5, %v3784_v14  ;;  %2941 = vmatprep.mubr.f32.mxu0 %v5254_v1 }
 0x14a   : > { %1375 = vmatprep.mubr.f32.mxu1 %v5254_v1 }
 0x14c   : > { %3968 = vmatmul.mubr.msk.f32.gmra.mrb[16].mxu0 %vm593_vm5, %v3950_v20 }
 0x14d   : > { %3803 = vmatmul.mubr.msk.f32.gmra.mrb[26].mxu1 %vm593_vm5, %v3785_v22  ;;  %2947 = vmatprep.mubr.f32.mxu0 %v5254_v1 }
 0x14e   : > { %1381 = vmatprep.mubr.f32.mxu1 %v5254_v1 }
 0x150   : > { %3969 = vmatmul.mubr.msk.f32.gmra.mrb[18].mxu0 %vm593_vm5, %v3951_v30 }
 0x151   : > { %3804 = vmatmul.mubr.msk.f32.gmra.mrb[28].mxu1 %vm593_vm5, %v3786_v33  ;;  %2953 = vmatprep.mubr.f32.mxu0 %v5254_v1 }
 0x152   : > { %1387 = vmatprep.mubr.f32.mxu1 %v5254_v1 }
 0x154   : > { %3970 = vmatmul.mubr.msk.f32.gmra.mrb[20].mxu0 %vm593_vm5, %v3952_v43 }
 0x155   : > { %3805 = vmatmul.mubr.msk.f32.gmra.mrb[30].mxu1 %vm593_vm5, %v3787_v44  ;;  %2959 = vmatprep.mubr.f32.mxu0 %v5254_v1 }
 0x156   : > { %1608 = vmatprep.mubr.f32.mxu1 %v5254_v1 }
 0x158   : > { %3971 = vmatmul.mubr.msk.f32.gmra.mrb[22].mxu0 %vm593_vm5, %v3953_v45 }
 0x159   : > { %3824 = vmatmul.mubr.msk.f32.vlgmr.msra.gmra.mrb[0].mxu1 %vm593_vm5, %v3806_v42  ;;  %2965 = vmatprep.mubr.f32.mxu0 %v5254_v1 }
 0x15a   : > { %1614 = vmatprep.mubr.f32.mxu1 %v5254_v1  ;;  %4092 = vmatpush1.bf16.msra.mxu1 %v4874_v52  ;;  %v4693_v52 = vld [vmem:[#allocation2 + $0x90] sm:$0xf] }
 0x15b   : > { %4090 = vmatprep.subr.bf16.mxu1 %v4878_v53  ;;  %v3956_v53 = vld [vmem:[%s6107_s3 + $0x3f0] sm:$0xff] }
 0x15c   : > { %3972 = vmatmul.mubr.msk.f32.gmra.mrb[24].mxu0 %vm593_vm5, %v3954_v32 }
 0x15d   : > { %3825 = vmatmul.mubr.msk.f32.gmra.mrb[2].mxu1 %vm593_vm5, %v3807_v36  ;;  %2971 = vmatprep.mubr.f32.mxu0 %v5254_v1 }
 0x15e   : > { %1620 = vmatprep.mubr.f32.mxu1 %v5254_v1  ;;  %4093 = vmatpush1.bf16.msra.mxu1 %v4885_v55  ;;  %v4694_v55 = vld [vmem:[#allocation2 + $0x88] sm:$0xf] }
 0x15f   : > { %4091 = vmatprep.subr.msk.mxu1 %vm642_vm4, %v4693_v52 }
 0x160   : > { %3973 = vmatmul.mubr.msk.f32.gmra.mrb[26].mxu0 %vm593_vm5, %v3955_v50 }
 0x161   : > { %3826 = vmatmul.mubr.msk.f32.gmra.mrb[4].mxu1 %vm593_vm5, %v3808_v47  ;;  %2977 = vmatprep.mubr.f32.mxu0 %v5254_v1 }
 0x162   : > { %1626 = vmatprep.mubr.f32.mxu1 %v5254_v1  ;;  %4094 = vmatpush1.msk.msra.mxu1 %vm642_vm4, %v4694_v55 }
 0x164   : > { %3974 = vmatmul.mubr.msk.f32.gmra.mrb[28].mxu0 %vm593_vm5, %v3956_v53 }
 0x165   : > { %3827 = vmatmul.mubr.msk.f32.gmra.mrb[6].mxu1 %vm593_vm5, %v3809_v46  ;;  %2983 = vmatprep.mubr.f32.mxu0 %v5254_v1 }
 0x166   : > { %1632 = vmatprep.mubr.f32.mxu1 %v5254_v1 }
 0x168   : > { %3975 = vmatmul.mubr.msk.f32.gmra.mrb[30].mxu0 %vm593_vm5, %v3957_v58 }
 0x169   : > { %3828 = vmatmul.mubr.msk.f32.gmra.mrb[8].mxu1 %vm593_vm5, %v3810_v37  ;;  %3204 = vmatprep.mubr.f32.mxu0 %v5254_v1 }
 0x16a   : > { %1638 = vmatprep.mubr.f32.mxu1 %v5254_v1 }
 0x16c   : > { %3994 = vmatmul.mubr.msk.f32.vlgmr.msra.gmra.mrb[0].mxu0 %vm593_vm5, %v3976_v38 }
 0x16d   : > { %3829 = vmatmul.mubr.msk.f32.gmra.mrb[10].mxu1 %vm593_vm5, %v3811_v39  ;;  %3210 = vmatprep.mubr.f32.mxu0 %v5254_v1 }
 0x16e   : > { %1644 = vmatprep.mubr.f32.mxu1 %v5254_v1 }
 0x170   : > { %3995 = vmatmul.mubr.msk.f32.gmra.mrb[2].mxu0 %vm593_vm5, %v3977_v40 }
 0x171   : > { %3830 = vmatmul.mubr.msk.f32.gmra.mrb[12].mxu1 %vm593_vm5, %v3812_v51  ;;  %3216 = vmatprep.mubr.f32.mxu0 %v5254_v1 }
 0x172   : > { %1650 = vmatprep.mubr.f32.mxu1 %v5254_v1 }
 0x174   : > { %3996 = vmatmul.mubr.msk.f32.gmra.mrb[4].mxu0 %vm593_vm5, %v3978_v59 }
 0x175   : > { %3831 = vmatmul.mubr.msk.f32.gmra.mrb[14].mxu1 %vm593_vm5, %v3813_v61  ;;  %3222 = vmatprep.mubr.f32.mxu0 %v5254_v1 }
 0x176   : > { %1656 = vmatprep.mubr.f32.mxu1 %v5254_v1 }
 0x178   : > { %3997 = vmatmul.mubr.msk.f32.gmra.mrb[6].mxu0 %vm593_vm5, %v3979_v19 }
 0x179   : > { %3832 = vmatmul.mubr.msk.f32.gmra.mrb[16].mxu1 %vm593_vm5, %v3814_v23  ;;  %3228 = vmatprep.mubr.f32.mxu0 %v5254_v1 }
 0x17a   : > { %1662 = vmatprep.mubr.f32.mxu1 %v5254_v1 }
 0x17c   : > { %3998 = vmatmul.mubr.msk.f32.gmra.mrb[8].mxu0 %vm593_vm5, %v3980_v18 }
 0x17d   : > { %3833 = vmatmul.mubr.msk.f32.gmra.mrb[18].mxu1 %vm593_vm5, %v3815_v25  ;;  %3234 = vmatprep.mubr.f32.mxu0 %v5254_v1 }
 0x17e   : > { %1668 = vmatprep.mubr.f32.mxu1 %v5254_v1 }
 0x180   : > { %3999 = vmatmul.mubr.msk.f32.gmra.mrb[10].mxu0 %vm593_vm5, %v3981_v62 }
 0x181   : > { %3834 = vmatmul.mubr.msk.f32.gmra.mrb[20].mxu1 %vm593_vm5, %v3816_v26  ;;  %3240 = vmatprep.mubr.f32.mxu0 %v5254_v1 }
 0x182   : > { %1674 = vmatprep.mubr.f32.mxu1 %v5254_v1 }
 0x184   : > { %4000 = vmatmul.mubr.msk.f32.gmra.mrb[12].mxu0 %vm593_vm5, %v3982_v6 }
 0x185   : > { %3835 = vmatmul.mubr.msk.f32.gmra.mrb[22].mxu1 %vm593_vm5, %v3817_v27  ;;  %3246 = vmatprep.mubr.f32.mxu0 %v5254_v1 }
 0x186   : > { %1680 = vmatprep.mubr.f32.mxu1 %v5254_v1 }
 0x188   : > { %4001 = vmatmul.mubr.msk.f32.gmra.mrb[14].mxu0 %vm593_vm5, %v3983_v12 }
 0x189   : > { %3836 = vmatmul.mubr.msk.f32.gmra.mrb[24].mxu1 %vm593_vm5, %v3818_v5  ;;  %3252 = vmatprep.mubr.f32.mxu0 %v5254_v1 }
 0x18a   : > { %1686 = vmatprep.mubr.f32.mxu1 %v5254_v1 }
 0x18c   : > { %4002 = vmatmul.mubr.msk.f32.gmra.mrb[16].mxu0 %vm593_vm5, %v3984_v10 }
 0x18d   : > { %3837 = vmatmul.mubr.msk.f32.gmra.mrb[26].mxu1 %vm593_vm5, %v3819_v2  ;;  %3258 = vmatprep.mubr.f32.mxu0 %v5254_v1 }
 0x18e   : > { %1692 = vmatprep.mubr.f32.mxu1 %v5254_v1 }
 0x190   : > { %4003 = vmatmul.mubr.msk.f32.gmra.mrb[18].mxu0 %vm593_vm5, %v3985_v7 }
 0x191   : > { %3838 = vmatmul.mubr.msk.f32.gmra.mrb[28].mxu1 %vm593_vm5, %v3820_v11  ;;  %3264 = vmatprep.mubr.f32.mxu0 %v5254_v1 }
 0x192   : > { %1698 = vmatprep.mubr.f32.mxu1 %v5254_v1 }
 0x194   : > { %4004 = vmatmul.mubr.msk.f32.gmra.mrb[20].mxu0 %vm593_vm5, %v3986_v15 }
 0x195   : > { %3839 = vmatmul.mubr.msk.f32.gmra.mrb[30].mxu1 %vm593_vm5, %v3821_v16  ;;  %3270 = vmatprep.mubr.f32.mxu0 %v5254_v1 }
 0x196   : > { %1918 = vmatprep.mubr.f32.mxu1 %v5254_v1  ;;  %v3989_v1 = vld [vmem:[%s6107_s3 + $0x468] sm:$0xff] }
 0x197   : > { %v3341_v15 = vpop.permute.xlu1 %3340 }
 0x198   : > { %4005 = vmatmul.mubr.msk.f32.gmra.mrb[22].mxu0 %vm593_vm5, %v3987_v3 }
 0x199   : > { %3866 = vmatmul.mubr.msk.f32.vlgmr.msra.gmra.mrb[16].mxu1 %vm593_vm5, %v3848_v28  ;;  %3276 = vmatprep.mubr.f32.mxu0 %v4695_v29  ;;  %v3336_v28 = vpop.permute.xlu0 %3335 }
 0x19a   : > { %1924 = vmatprep.mubr.f32.mxu1 %v4695_v29 }
 0x19c   : > { %4006 = vmatmul.mubr.msk.f32.gmra.mrb[24].mxu0 %vm593_vm5, %v3988_v41 }
 0x19d   : > { %3867 = vmatmul.mubr.msk.f32.gmra.mrb[18].mxu1 %vm593_vm5, %v3849_v48  ;;  %3282 = vmatprep.mubr.f32.mxu0 %v4695_v29  ;;  %v3346_v48 = vpop.permute.xlu1 %3345 }
 0x19e   : > { %1930 = vmatprep.mubr.f32.mxu1 %v4695_v29 }
 0x1a0   : > { %4007 = vmatmul.mubr.msk.f32.gmra.mrb[26].mxu0 %vm593_vm5, %v3989_v1  ;;  %v3351_v1 = vpop.permute.xlu0 %3350 }
 0x1a1   : > { %3868 = vmatmul.mubr.msk.f32.gmra.mrb[20].mxu1 %vm593_vm5, %v3850_v49  ;;  %3288 = vmatprep.mubr.f32.mxu0 %v4695_v29 }
 0x1a2   : > { %1936 = vmatprep.mubr.f32.mxu1 %v4695_v29 }
 0x1a4   : > { %4008 = vmatmul.mubr.msk.f32.gmra.mrb[28].mxu0 %vm593_vm5, %v3990_v8 }
 0x1a5   : > { %3869 = vmatmul.mubr.msk.f32.gmra.mrb[22].mxu1 %vm593_vm5, %v3851_v54  ;;  %3294 = vmatprep.mubr.f32.mxu0 %v4695_v29  ;;  %v3356_v54 = vpop.permute.xlu1 %3355 }
 0x1a6   : > { %1942 = vmatprep.mubr.f32.mxu1 %v4695_v29 }
 0x1a8   : > { %4009 = vmatmul.mubr.msk.f32.gmra.mrb[30].mxu0 %vm593_vm5, %v3991_v56 }
 0x1a9   : > { %3870 = vmatmul.mubr.msk.f32.gmra.mrb[24].mxu1 %vm593_vm5, %v3852_v60 }
 0x1aa   : > { %1948 = vmatprep.mubr.f32.mxu1 %v4695_v29 }
 0x1ad   : > { %3871 = vmatmul.mubr.msk.f32.gmra.mrb[26].mxu1 %vm593_vm5, %v3853_v63  ;;  %v3361_v63 = vpop.permute.xlu0 %3360 }
 0x1ae   : > { %1954 = vmatprep.mubr.f32.mxu1 %v4695_v29 }
 0x1b1   : > { %3872 = vmatmul.mubr.msk.f32.gmra.mrb[28].mxu1 %vm593_vm5, %v3854_v0 }
 0x1b2   : > { %1960 = vmatprep.mubr.f32.mxu1 %v4695_v29 }
 0x1b5   : > { %3873 = vmatmul.mubr.msk.f32.gmra.mrb[30].mxu1 %vm593_vm5, %v3855_v4 }
 0x22c   : > { %v1610_v9 = vpop.f32.mrb[0].mxu1 }
 0x22d   : > { %v1612_v13 = vpop.f32.mrb[1].mxu1 }
 0x230   : > { %v1616_v14 = vpop.f32.mrb[2].mxu1 }
 0x231   : > { %v1618_v17 = vpop.f32.mrb[3].mxu1 }
 0x234   : > { %v1622_v20 = vpop.f32.mrb[4].mxu1 }
 0x235   : > { %v1624_v21 = vpop.f32.mrb[5].mxu1 }
 0x238   : > { %v1628_v22 = vpop.f32.mrb[6].mxu1 }
 0x239   : > { %v1630_v24 = vpop.f32.mrb[7].mxu1 }
 0x23c   : > { %v1634_v30 = vpop.f32.mrb[8].mxu1 }
 0x23d   : > { %v1636_v31 = vpop.f32.mrb[9].mxu1 }
 0x23f   : > { %v3206_v33 = vpop.f32.mrb[0].mxu0 }
 0x240   : > { %v4095_v34 = vadd.f32 %v3206_v33, %v1610_v9  ;;  %v1640_v43 = vpop.f32.mrb[10].mxu1  ;;  %v3208_v35 = vpop.f32.mrb[1].mxu0 }
 0x241   : > { %v4096_v44 = vadd.f32 %v3208_v35, %v1612_v13  ;;  %v1642_v57 = vpop.f32.mrb[11].mxu1 }
 0x242   : > { %v3413_v56 = vadd.f32 %v4095_v34, %v3336_v28 }
 0x243   : > { %v3212_v45 = vpop.f32.mrb[2].mxu0  ;;  %v3414_v60 = vadd.f32 %v4096_v44, %v3336_v28 }
 0x244   : > { %v4097_v42 = vadd.f32 %v3212_v45, %v1616_v14  ;;  %v1646_v32 = vpop.f32.mrb[12].mxu1  ;;  %v3214_v36 = vpop.f32.mrb[3].mxu0  ;;  %4612 = vtanh.f32 %v3413_v56 }
 0x245   : > { %v4098_v50 = vadd.f32 %v3214_v36, %v1618_v17  ;;  %v1648_v47 = vpop.f32.mrb[13].mxu1  ;;  %v3366_v14 = vpop.permute.xlu1 %3365  ;;  %4614 = vtanh.f32 %v3414_v60  ;;  %v3525_v60 = vld [vmem:[%s6028_s7] sm:$0xff] }
 0x246   : > { %v3415_v4 = vadd.f32 %v4097_v42, %v3341_v15 }
 0x247   : > { %v3218_v52 = vpop.f32.mrb[4].mxu0 }
 0x248   : > { %v4099_v53 = vadd.f32 %v3218_v52, %v1622_v20  ;;  %v1652_v46 = vpop.f32.mrb[14].mxu1  ;;  %v3220_v55 = vpop.f32.mrb[5].mxu0  ;;  %4616 = vtanh.f32 %v3415_v4 }
 0x249   : > { %v4100_v58 = vadd.f32 %v3220_v55, %v1624_v21  ;;  %v1654_v37 = vpop.f32.mrb[15].mxu1  ;;  %v5987_v34 = vpop.permute.xlu1 %3395 }
 0x24a   : > { %v3417_v44 = vadd.f32 %v4099_v53, %v3346_v48 }
 0x24b   : > { %v3224_v38 = vpop.f32.mrb[6].mxu0  ;;  %v3418_v45 = vadd.f32 %v4100_v58, %v3346_v48 }
 0x24c   : > { %v4101_v39 = vadd.f32 %v3224_v38, %v1628_v22  ;;  %v3226_v40 = vpop.f32.mrb[7].mxu0  ;;  %v3416_v22 = vadd.f32 %v4098_v50, %v3341_v15 }
 0x24d   : > { %v5971_v51 = vadd.f32 %v3226_v40, %v1630_v24  ;;  %v3371_v24 = vpop.permute.xlu0 %3370  ;;  %v6003_v40 = vpop.permute.xlu1 %3405 }
 0x24e   : > { %4618 = vtanh.f32 %v3416_v22 }
 0x24f   : > { %v3230_v59 = vpop.f32.mrb[8].mxu0  ;;  %4620 = vtanh.f32 %v3417_v44 }
 0x250   : > { %v4103_v61 = vadd.f32 %v3230_v59, %v1634_v30  ;;  %v3232_v19 = vpop.f32.mrb[9].mxu0  ;;  %4622 = vtanh.f32 %v3418_v45 }
 0x251   : > { %v4104_v23 = vadd.f32 %v3232_v19, %v1636_v31  ;;  %v5997_v52 = vpop.permute.xlu0 %3400 }
 0x253   : > { %v3236_v18 = vpop.f32.mrb[10].mxu0 }
 0x254   : > { %v4105_v25 = vadd.f32 %v3236_v18, %v1640_v43  ;;  %v3238_v62 = vpop.f32.mrb[11].mxu0 }
 0x255   : > { %v5973_v26 = vadd.f32 %v3238_v62, %v1642_v57  ;;  %v3420_v62 = vadd.f32 %v5971_v51, %v3351_v1  ;;  %v6017_v15 = vpop.permute.xlu0 %3410 }
 0x256   : > { %v3423_v53 = vadd.f32 %v4105_v25, %v3361_v63 }
 0x257   : > { %v3242_v6 = vpop.f32.mrb[12].mxu0  ;;  %v3424_v59 = vadd.f32 %v5973_v26, %v3361_v63 }
 0x258   : > { %v5975_v27 = vadd.f32 %v3242_v6, %v1646_v32  ;;  %v3244_v12 = vpop.f32.mrb[13].mxu0  ;;  %v3419_v32 = vadd.f32 %v4101_v39, %v3351_v1  ;;  %v4613_v39 = vpop.eup %4612 }
 0x259   : > { %v5977_v5 = vadd.f32 %v3244_v12, %v1648_v47  ;;  %v3421_v47 = vadd.f32 %v4103_v61, %v3356_v54  ;;  %v4615_v18 = vpop.eup %4614  ;;  %v3381_v22 = vpop.permute.xlu0 %3380 }
 0x25a   : > { %4624 = vtanh.f32 %v3419_v32  ;;  %v4617_v25 = vpop.eup %4616  ;;  %v3425_v12 = vadd.f32 %v5975_v27, %v3366_v14  ;;  %v3478_v27 = vmul.f32 0.5, %v4615_v18 }
 0x25b   : > { %v3248_v10 = vpop.f32.mrb[14].mxu0  ;;  %4626 = vtanh.f32 %v3421_v47  ;;  %v3426_v26 = vadd.f32 %v5977_v5, %v3366_v14  ;;  %v3376_v5 = vpop.permute.xlu1 %3375 }
 0x25c   : > { %v5979_v2 = vadd.f32 %v3248_v10, %v1652_v46  ;;  %v3250_v7 = vpop.f32.mrb[15].mxu0  ;;  %v3486_v14 = vadd.f32 0.5, %v3478_v27 }
 0x25d   : > { %v5981_v11 = vadd.f32 %v3250_v7, %v1654_v37  ;;  %v3422_v37 = vadd.f32 %v4104_v23, %v3356_v54  ;;  %v3477_v7 = vmul.f32 0.5, %v4613_v39  ;;  %v3528_v39 = vld [vmem:[%s6028_s7 + $0x18] sm:$0xff] }
 0x25e   : > { %v3427_v51 = vadd.f32 %v5979_v2, %v3371_v24 }
 0x25f   : > { %v3254_v16 = vpop.f32.mrb[16].mxu0  ;;  %4628 = vtanh.f32 %v3422_v37  ;;  %v3428_v2 = vadd.f32 %v5981_v11, %v3371_v24 }
 0x260   : > { %v3256_v3 = vpop.f32.mrb[17].mxu0  ;;  %4630 = vtanh.f32 %v3423_v53 }
 0x261   : > { %4632 = vtanh.f32 %v3424_v59  ;;  %v3386_v59 = vpop.permute.xlu1 %3385 }
 0x262   : > { %4634 = vtanh.f32 %v3420_v62 }
 0x263   : > { %v3260_v29 = vpop.f32.mrb[18].mxu0  ;;  %4636 = vtanh.f32 %v3425_v12 }
 0x264   : > { %v3262_v41 = vpop.f32.mrb[19].mxu0  ;;  %4638 = vtanh.f32 %v3426_v26 }
 0x265   : > { %4640 = vtanh.f32 %v3427_v51 }
 0x267   : > { %v3266_v49 = vpop.f32.mrb[20].mxu0 }
 0x268   : > { %v3268_v8 = vpop.f32.mrb[21].mxu0 }
 0x26b   : > { %v3272_v0 = vpop.f32.mrb[22].mxu0 }
 0x26c   : > { %v1920_v9 = vpop.f32.mrb[16].mxu1  ;;  %v3274_v13 = vpop.f32.mrb[23].mxu0 }
 0x26d   : > { %v5983_v17 = vadd.f32 %v3254_v16, %v1920_v9  ;;  %v1922_v20 = vpop.f32.mrb[17].mxu1 }
 0x26e   : > { %v5985_v21 = vadd.f32 %v3256_v3, %v1922_v20 }
 0x26f   : > { %v3278_v30 = vpop.f32.mrb[24].mxu0 }
 0x270   : > { %v1926_v31 = vpop.f32.mrb[18].mxu1  ;;  %v3280_v33 = vpop.f32.mrb[25].mxu0 }
 0x271   : > { %v5989_v43 = vadd.f32 %v3260_v29, %v1926_v31  ;;  %v1928_v35 = vpop.f32.mrb[19].mxu1  ;;  %v4619_v29 = vpop.eup %4618  ;;  %v3526_v31 = vld [vmem:[%s6028_s7 + $0x8] sm:$0xff] }
 0x272   : > { %v5991_v57 = vadd.f32 %v3262_v41, %v1928_v35  ;;  %v3479_v41 = vmul.f32 0.5, %v4617_v25  ;;  %v4621_v56 = vpop.eup %4620  ;;  %v3480_v63 = vmul.f32 0.5, %v4619_v29  ;;  %v3534_v53 = vmul.f32 %v3526_v31, %v3486_v14  ;;  %v3529_v14 = vld [vmem:[%s6028_s7 + $0x20] sm:$0xff] }
 0x273   : > { %v5993_v42 = vpop.f32.mrb[26].mxu0  ;;  %v3481_v62 = vmul.f32 0.5, %v4621_v56 }
 0x274   : > { %v1932_v36 = vpop.f32.mrb[20].mxu1  ;;  %v5995_v50 = vpop.f32.mrb[27].mxu0  ;;  %v3487_v20 = vadd.f32 0.5, %v3479_v41 }
 0x275   : > { %v5999_v46 = vadd.f32 %v3266_v49, %v1932_v36  ;;  %v1934_v55 = vpop.f32.mrb[21].mxu1  ;;  %v3488_v36 = vadd.f32 0.5, %v3480_v63 }
 0x276   : > { %v6001_v38 = vadd.f32 %v3268_v8, %v1934_v55  ;;  %v3485_v8 = vadd.f32 0.5, %v3477_v7 }
 0x277   : > { %v6005_v58 = vpop.f32.mrb[28].mxu0  ;;  %v6054_v51 = vmul.f32 %v3528_v39, %v3488_v36 }
 0x278   : > { %v1938_v61 = vpop.f32.mrb[22].mxu1  ;;  %v6008_v19 = vpop.f32.mrb[29].mxu0  ;;  %v6041_v44 = vmul.f32 %v3525_v60, %v3485_v8  ;;  %v3489_v60 = vadd.f32 0.5, %v3481_v62 }
 0x279   : > { %v6011_v23 = vadd.f32 %v3272_v0, %v1938_v61  ;;  %v1940_v6 = vpop.f32.mrb[23].mxu1  ;;  %v3429_v0 = vadd.f32 %v5983_v17, %v3376_v5 }
 0x27a   : > { %v6014_v10 = vadd.f32 %v3274_v13, %v1940_v6  ;;  %v4623_v13 = vpop.eup %4622  ;;  %v3537_v36 = vmul.f32 %v3529_v14, %v3489_v60 }
 0x27b   : > { %v6019_v16 = vpop.f32.mrb[30].mxu0 }
 0x27c   : > { %v1944_v3 = vpop.f32.mrb[24].mxu1  ;;  %v6022_v28 = vpop.f32.mrb[31].mxu0 }
 0x27d   : > { %v4119_v48 = vadd.f32 %v3278_v30, %v1944_v3  ;;  %v1946_v1 = vpop.f32.mrb[25].mxu1  ;;  %v6036_v30 = vpop.eup %4624 }
 0x27e   : > { %v4120_v49 = vadd.f32 %v3280_v33, %v1946_v1  ;;  %v3527_v33 = vld [vmem:[%s6028_s7 + $0x10] sm:$0xff]  ;;  %v4627_v17 = vpop.eup %4626 }
 0x27f   : > { %v3437_v54 = vadd.f32 %v4119_v48, %v5987_v34  ;;  %v4629_v32 = vpop.eup %4628  ;;  %v3493_v6 = vmul.f32 0.5, %v4627_v17  ;;  %v3483_v17 = vmul.f32 0.5, %v6036_v30 }
 0x280   : > { %v3438_v4 = vadd.f32 %v4120_v49, %v5987_v34  ;;  %v1950_v9 = vpop.f32.mrb[26].mxu1  ;;  %v3430_v34 = vadd.f32 %v5985_v21, %v3376_v5  ;;  %v4631_v37 = vpop.eup %4630  ;;  %v3494_v12 = vmul.f32 0.5, %v4629_v32 }
 0x281   : > { %4642 = vtanh.f32 %v3437_v54  ;;  %v4121_v11 = vadd.f32 %v5993_v42, %v1950_v9  ;;  %v1952_v24 = vpop.f32.mrb[27].mxu1  ;;  %v3431_v42 = vadd.f32 %v5989_v43, %v3381_v22  ;;  %v4633_v18 = vpop.eup %4632  ;;  %v3495_v41 = vmul.f32 0.5, %v4631_v37 }
 0x282   : > { %4644 = vtanh.f32 %v3438_v4  ;;  %v4122_v35 = vadd.f32 %v5995_v50, %v1952_v24  ;;  %v6048_v50 = vmul.f32 %v3527_v33, %v3487_v20  ;;  %v4635_v43 = vpop.eup %4634  ;;  %v3496_v5 = vmul.f32 0.5, %v4633_v18 }
 0x283   : > { %4646 = vtanh.f32 %v3428_v2  ;;  %v3439_v45 = vadd.f32 %v4121_v11, %v5997_v52  ;;  %v4637_v26 = vpop.eup %4636  ;;  %v3501_v49 = vadd.f32 0.5, %v3493_v6  ;;  %v3502_v54 = vadd.f32 0.5, %v3494_v12  ;;  %v3532_v12 = vld [vmem:[%s6028_s7 + $0x38] sm:$0xff] }
 0x284   : > { %4648 = vtanh.f32 %v3429_v0  ;;  %v3440_v47 = vadd.f32 %v4122_v35, %v5997_v52  ;;  %v1956_v55 = vpop.f32.mrb[28].mxu1  ;;  %v3432_v52 = vadd.f32 %v5991_v57, %v3381_v22  ;;  %v4639_v27 = vpop.eup %4638  ;;  %v3482_v57 = vmul.f32 0.5, %v4623_v13 }
 0x285   : > { %4650 = vtanh.f32 %v3439_v45  ;;  %v4123_v61 = vadd.f32 %v6005_v58, %v1956_v55  ;;  %v1958_v21 = vpop.f32.mrb[29].mxu1  ;;  %v3433_v58 = vadd.f32 %v5999_v46, %v3386_v59  ;;  %v4641_v1 = vpop.eup %4640  ;;  %v3434_v46 = vadd.f32 %v6001_v38, %v3386_v59 }
 0x286   : > { %4652 = vtanh.f32 %v3440_v47  ;;  %v4124_v25 = vadd.f32 %v6008_v19, %v1958_v21  ;;  %v3503_v4 = vadd.f32 0.5, %v3495_v41  ;;  %v3504_v9 = vadd.f32 0.5, %v3496_v5  ;;  %v3391_v13 = vpop.permute.xlu0 %3390  ;;  %v3530_v47 = vld [vmem:[%s6028_s7 + $0x28] sm:$0xff] }
 0x287   : > { %4654 = vtanh.f32 %v3430_v34  ;;  %v3441_v7 = vadd.f32 %v4123_v61, %v6003_v40  ;;  %v3497_v20 = vmul.f32 0.5, %v4637_v26  ;;  %v3435_v22 = vadd.f32 %v6011_v23, %v3391_v13 }
 0x288   : > { %4656 = vtanh.f32 %v3431_v42  ;;  %v3442_v3 = vadd.f32 %v4124_v25, %v6003_v40  ;;  %v1962_v29 = vpop.f32.mrb[30].mxu1  ;;  %v3498_v24 = vmul.f32 0.5, %v4639_v27  ;;  %v3436_v31 = vadd.f32 %v6014_v10, %v3391_v13 }
 0x289   : > { %4658 = vtanh.f32 %v3441_v7  ;;  %v4125_v19 = vadd.f32 %v6019_v16, %v1962_v29  ;;  %v1964_v48 = vpop.f32.mrb[31].mxu1  ;;  %v3484_v34 = vmul.f32 0.5, %v4635_v43  ;;  %v3490_v23 = vadd.f32 0.5, %v3482_v57  ;;  %v3531_v43 = vld [vmem:[%s6028_s7 + $0x30] sm:$0xff] }
 0x28a   : > { %4660 = vtanh.f32 %v3442_v3  ;;  %v4126_v8 = vadd.f32 %v6022_v28, %v1964_v48  ;;  %v3505_v55 = vadd.f32 0.5, %v3497_v20  ;;  %v3499_v37 = vmul.f32 0.5, %v4641_v1 }
 0x28b   : > { %v4643_v2 = vpop.eup %4642  ;;  %4662 = vtanh.f32 %v3432_v52  ;;  %v3443_v40 = vadd.f32 %v4125_v19, %v6017_v15  ;;  %v3491_v21 = vadd.f32 0.5, %v3483_v17  ;;  %v3492_v18 = vadd.f32 0.5, %v3484_v34 }
 0x28c   : > { %v4645_v56 = vpop.eup %4644  ;;  %4664 = vtanh.f32 %v3433_v58  ;;  %v3541_v16 = vmul.f32 %v4643_v2, %v3501_v49  ;;  %v3444_v63 = vadd.f32 %v4126_v8, %v6017_v15  ;;  %v3538_v25 = vmul.f32 %v3530_v47, %v3490_v23 }
 0x28d   : > { %v4647_v0 = vpop.eup %4646  ;;  %v3542_v28 = vmul.f32 %v4645_v56, %v3502_v54  ;;  %4666 = vtanh.f32 %v3443_v40  ;;  %v3507_v26 = vadd.f32 0.5, %v3499_v37  ;;  %v3539_v5 = vmul.f32 %v3531_v43, %v3491_v21 }
 0x28e   : > { %v4649_v38 = vpop.eup %4648  ;;  %v3549_v11 = vadd.f32 %v3541_v16, %v6041_v44  ;;  %4668 = vtanh.f32 %v3444_v63  ;;  %v3500_v39 = vmul.f32 0.5, %v4647_v0  ;;  %v3540_v19 = vmul.f32 %v3532_v12, %v3492_v18 }
 0x28f   : > { %v4651_v15 = vpop.eup %4650  ;;  %4670 = vtanh.f32 %v3434_v46  ;;  %v3550_v33 = vadd.f32 %v3542_v28, %v3534_v53  ;;  %v3506_v53 = vadd.f32 0.5, %v3498_v24  ;;  %v3509_v52 = vmul.f32 0.5, %v4649_v38 }
 0x290   : > { %v4653_v35 = vpop.eup %4652  ;;  %4672 = vtanh.f32 %v3549_v11  ;;  %3573 = vst [vmem:[%s6067_s10] sm:$0xff] %v3549_v11  ;;  %v3543_v45 = vmul.f32 %v4651_v15, %v3503_v4  ;;  %v3508_v29 = vadd.f32 0.5, %v3500_v39 }
 0x291   : > { %v4655_v32 = vpop.eup %4654  ;;  %4674 = vtanh.f32 %v3550_v33  ;;  %3574 = vst [vmem:[%s6067_s10 + $0x8] sm:$0xff] %v3550_v33  ;;  %v3544_v44 = vmul.f32 %v4653_v35, %v3504_v9  ;;  %v3517_v57 = vadd.f32 0.5, %v3509_v52 }
 0x292   : > { %v4657_v42 = vpop.eup %4656  ;;  %4676 = vtanh.f32 %v3435_v22  ;;  %v3551_v10 = vadd.f32 %v3543_v45, %v6048_v50  ;;  %v3510_v58 = vmul.f32 0.5, %v4655_v32 }
 0x293   : > { %v4659_v30 = vpop.eup %4658  ;;  %4678 = vtanh.f32 %v3436_v31  ;;  %v3552_v59 = vadd.f32 %v3544_v44, %v6054_v51  ;;  %v3511_v49 = vmul.f32 0.5, %v4657_v42 }
 0x294   : > { %v4661_v61 = vpop.eup %4660  ;;  %4680 = vtanh.f32 %v3551_v10  ;;  %3575 = vst [vmem:[%s6067_s10 + $0x10] sm:$0xff] %v3551_v10  ;;  %v3545_v62 = vmul.f32 %v4659_v30, %v3505_v55  ;;  %v3518_v54 = vadd.f32 0.5, %v3510_v58 }
 0x295   : > { %v4663_v6 = vpop.eup %4662  ;;  %4682 = vtanh.f32 %v3552_v59  ;;  %3576 = vst [vmem:[%s6067_s10 + $0x18] sm:$0xff] %v3552_v59  ;;  %v3546_v50 = vmul.f32 %v4661_v61, %v3506_v53  ;;  %v3519_v9 = vadd.f32 0.5, %v3511_v49 }
 0x296   : > { %v4665_v7 = vpop.eup %4664  ;;  %v3553_v51 = vadd.f32 %v3545_v62, %v3537_v36  ;;  %v3512_v46 = vmul.f32 0.5, %v4663_v6 }
 0x297   : > { %v4667_v3 = vpop.eup %4666  ;;  %v3554_v27 = vadd.f32 %v3546_v50, %v3538_v25  ;;  %v3513_v13 = vmul.f32 0.5, %v4665_v7 }
 0x298   : > { %v4669_v41 = vpop.eup %4668  ;;  %4684 = vtanh.f32 %v3553_v51  ;;  %3577 = vst [vmem:[%s6067_s10 + $0x20] sm:$0xff] %v3553_v51  ;;  %v3547_v48 = vmul.f32 %v4667_v3, %v3507_v26  ;;  %v3520_v38 = vadd.f32 0.5, %v3512_v46 }
 0x299   : > { %v4671_v1 = vpop.eup %4670  ;;  %4686 = vtanh.f32 %v3554_v27  ;;  %3578 = vst [vmem:[%s6067_s10 + $0x28] sm:$0xff] %v3554_v27  ;;  %v3548_v8 = vmul.f32 %v4669_v41, %v3508_v29  ;;  %v3521_v15 = vadd.f32 0.5, %v3513_v13 }
 0x29a   : > { %v4673_v2 = vpop.eup %4672  ;;  %v3555_v40 = vadd.f32 %v3547_v48, %v3539_v5  ;;  %v3514_v14 = vmul.f32 0.5, %v4671_v1 }
 0x29b   : > { %v4675_v56 = vpop.eup %4674  ;;  %v3565_v60 = vmul.f32 %v4673_v2, %v3517_v57  ;;  %v3556_v16 = vadd.f32 %v3548_v8, %v3540_v19 }
 0x29c   : > { %v4677_v63 = vpop.eup %4676  ;;  %v3566_v0 = vmul.f32 %v4675_v56, %v3518_v54  ;;  %4688 = vtanh.f32 %v3555_v40  ;;  %3579 = vst [vmem:[%s6067_s10 + $0x30] sm:$0xff] %v3555_v40  ;;  %v3522_v33 = vadd.f32 0.5, %v3514_v14 }
 0x29d   : > { %v4679_v4 = vpop.eup %4678  ;;  %3581 = vst [vmem:[%s6089_s13] sm:$0xff] %v3565_v60  ;;  %4690 = vtanh.f32 %v3556_v16  ;;  %3580 = vst [vmem:[%s6067_s10 + $0x38] sm:$0xff] %v3556_v16  ;;  %v3515_v24 = vmul.f32 0.5, %v4677_v63 }
 0x29e   : > { %v4681_v28 = vpop.eup %4680  ;;  %3582 = vst [vmem:[%s6089_s13 + $0x8] sm:$0xff] %v3566_v0  ;;  %v3516_v35 = vmul.f32 0.5, %v4679_v4 }
 0x29f   : > { %v4683_v20 = vpop.eup %4682  ;;  %v3567_v22 = vmul.f32 %v4681_v28, %v3519_v9  ;;  %v3523_v32 = vadd.f32 0.5, %v3515_v24 }
 0x2a0   : > { %v3568_v11 = vmul.f32 %v4683_v20, %v3520_v38  ;;  %v3524_v36 = vadd.f32 0.5, %v3516_v35 }
 0x2a1   : > { %3583 = vst [vmem:[%s6089_s13 + $0x10] sm:$0xff] %v3567_v22 }
 0x2a2   : > { %v4685_v31 = vpop.eup %4684  ;;  %3584 = vst [vmem:[%s6089_s13 + $0x18] sm:$0xff] %v3568_v11 }
 0x2a3   : > { %v4687_v17 = vpop.eup %4686  ;;  %v3569_v34 = vmul.f32 %v4685_v31, %v3521_v15 }
 0x2a4   : > { %v3570_v45 = vmul.f32 %v4687_v17, %v3522_v33 }
 0x2a5   : > { %3585 = vst [vmem:[%s6089_s13 + $0x20] sm:$0xff] %v3569_v34 }
 0x2a6   : > { %v4689_v23 = vpop.eup %4688  ;;  %3586 = vst [vmem:[%s6089_s13 + $0x28] sm:$0xff] %v3570_v45 }
 0x2a7   : > { %v4691_v44 = vpop.eup %4690  ;;  %v3571_v42 = vmul.f32 %v4689_v23, %v3523_v32 }
 0x2a8   : > { %v3572_v47 = vmul.f32 %v4691_v44, %v3524_v36 }
 0x2a9   : > { %3587 = vst [vmem:[%s6089_s13 + $0x30] sm:$0xff] %v3571_v42 }
 0x2aa   : > { %3588 = vst [vmem:[%s6089_s13 + $0x38] sm:$0xff] %v3572_v47 }
 0x2ab PF: > { %s17_s21 = sadd.s32 1, %s4702_s21  }
 0x2ac   : > { %p14_p4 = scmp.ge.s32.totalorder %s17_s21, 4  }
 0x2ae   :  { %16 = sbr.rel (!%p14_p4) target bundleno = 1 (0x1), region = 98 }

</bundles_post_ra>
